<compile_context>
chip_gen: v7x
topology: tpu7x:2x2x1
jax: 0.10.0
libtpu: 0.0.40
codegen_flags: <defaults>
</compile_context>

<pallas_src>
import jax
import jax.numpy as jnp
from jax import lax
from jax.experimental import pallas as pl
from jax.experimental.pallas import tpu as pltpu


def _mul_conv1x1_kernel(x_ref, s_ref, w_ref, o_ref):
    # x_ref: (C_in, HW)     f32 channel-major spatial slab (VMEM-resident)
    # s_ref: (C_in, 1)      f32 per-channel scale (lane-broadcast over HW)
    # w_ref: (TILE_CO, C_in) bf16 slice of 1x1 conv weight (native PyTorch layout)
    # o_ref: (TILE_CO, HW)  f32 output slice
    xs = (x_ref[...] * s_ref[...]).astype(w_ref.dtype)     # VPU mul + bf16 cast
    o_ref[...] = lax.dot_general(                            # 1x1 conv == W @ Xs (MXU)
        w_ref[...], xs,
        dimension_numbers=(((1,), (0,)), ((), ())),
        preferred_element_type=jnp.float32,
    ).astype(o_ref.dtype)


def _round_up(v, m):
    return ((v + m - 1) // m) * m


def mul_conv1x1(x_nchw, scale_1c11, weight_oi11):
    """x_nchw: (N, C_in, H, W) f32, scale_1c11: (1, C_in, 1, 1) f32,
    weight_oi11: (C_out, C_in, 1, 1), ideally stored persistently in bf16.
    Returns (N, C_out, H, W) in x's dtype."""
    N, C_in, H, W = x_nchw.shape
    C_out = weight_oi11.shape[0]
    HW = H * W

    # Pure channel-major reshapes: no transposes, no extra HBM traffic.
    x_mat = x_nchw.reshape(N, C_in, HW)
    s_mat = scale_1c11.reshape(C_in, 1)
    w_mat = weight_oi11.reshape(C_out, C_in)
    if w_mat.dtype != jnp.bfloat16:
        # Callers should pre-store the weight in bf16 so this cast (and the
        # doubled f32 HBM read) never happens on the hot path.
        w_mat = w_mat.astype(jnp.bfloat16)

    # 2-way C_out split: 888 -> tiles of 448 (divisible by 8); the last tile's
    # 8 padded rows are dropped on output writeback.
    tile_co = min(_round_up(pl.cdiv(C_out, 2), 8), _round_up(C_out, 8))
    grid = (N, pl.cdiv(C_out, tile_co))

    out_dtype = x_nchw.dtype
    itemsize = x_nchw.dtype.itemsize
    bytes_accessed = (
        N * C_in * HW * itemsize            # x read (f32)
        + C_in * itemsize                   # scale read
        + C_out * C_in * 2                  # weight read (bf16, dominant)
        + N * C_out * HW * itemsize         # output write
    )
    flops = 2 * N * HW * C_in * C_out

    out = pl.pallas_call(
        _mul_conv1x1_kernel,
        out_shape=jax.ShapeDtypeStruct((N, C_out, HW), out_dtype),
        grid=grid,
        in_specs=[
            # x / scale: constant over the C_out axis -> stay VMEM-resident.
            pl.BlockSpec((pl.Squeezed(), C_in, HW), lambda n, j: (n, 0, 0)),
            pl.BlockSpec((C_in, 1), lambda n, j: (0, 0)),
            # weight: streamed one C_out tile per step (double-buffered DMA).
            pl.BlockSpec((tile_co, C_in), lambda n, j: (j, 0)),
        ],
        out_specs=pl.BlockSpec((pl.Squeezed(), tile_co, HW),
                               lambda n, j: (n, j, 0)),
        compiler_params=pltpu.CompilerParams(
            dimension_semantics=("parallel", "parallel")),
        cost_estimate=pl.CostEstimate(
            flops=flops, transcendentals=0, bytes_accessed=bytes_accessed),
    )(x_mat, s_mat, w_mat)

    # (N, C_out, HW) -> (N, C_out, H, W): free reshape.
    return out.reshape(N, C_out, H, W)


if __name__ == "__main__":
    # Shapes implied by the module: x417 (1, 888, 7, 7), x422 (1, 888, 1, 1),
    # conv weight (888, 888, 1, 1).
    key = jax.random.PRNGKey(0)
    k1, k2, k3 = jax.random.split(key, 3)

    N, C, H, W = 1, 888, 7, 7
    x417 = jax.random.normal(k1, (N, C, H, W), dtype=jnp.float32)
    x422 = jax.random.normal(k2, (1, C, 1, 1), dtype=jnp.float32)
    weight_f32 = (jax.random.normal(k3, (C, C, 1, 1), dtype=jnp.float32)
                  * (1.0 / jnp.sqrt(jnp.float32(C))))
    # Weight stored persistently in bf16 (halves the dominant HBM read).
    weight = weight_f32.astype(jnp.bfloat16)

    out = mul_conv1x1(x417, x422, weight)
    out = jax.block_until_ready(out)

    # Reference with matched operand rounding (bf16 operands, f32 accumulate):
    xs_ref = (x417 * x422).astype(jnp.bfloat16).astype(jnp.float32)
    w_ref = weight.reshape(C, C).astype(jnp.float32)
    ref = jnp.einsum("oi,nihw->nohw", w_ref, xs_ref,
                     precision=lax.Precision.HIGHEST)

    assert out.shape == (N, C, H, W), out.shape
    max_err = float(jnp.max(jnp.abs(out - ref)))
    assert jnp.allclose(out, ref, atol=2e-3, rtol=2e-3), max_err
    print("KERNEL_OK")
</pallas_src>

<mosaic_0001>
module attributes {stable_mosaic.version = 11 : i64} {
  func.func @_mul_conv1x1_kernel(%arg0: i32, %arg1: i32, %arg2: memref<1x888x49xf32, #tpu.memory_space<vmem>>, %arg3: memref<888x1xf32, #tpu.memory_space<vmem>>, %arg4: memref<448x888xbf16, #tpu.memory_space<vmem>>, %arg5: memref<1x448x49xf32, #tpu.memory_space<vmem>>) attributes {dimension_semantics = [#tpu.dimension_semantics<parallel>, #tpu.dimension_semantics<parallel>], iteration_bounds = array<i64: 1, 2>, scalar_prefetch = 0 : i64, scratch_operands = 0 : i64, tpu.core_type = #tpu.core_type<tc>, window_params = [{transform_indices = @transform_0, window_bounds = array<i64: 1, 888, 49>}, {pipeline_mode = #tpu.pipeline_mode<synchronous>, transform_indices = @transform_1, window_bounds = array<i64: 888, 1>}, {transform_indices = @transform_2, window_bounds = array<i64: 448, 888>}, {transform_indices = @transform_3, window_bounds = array<i64: 1, 448, 49>}]} {
    %c0 = arith.constant 0 : index
    %c0_0 = arith.constant 0 : index
    %c0_1 = arith.constant 0 : index
    %0 = vector.load %arg2[%c0, %c0_0, %c0_1] : memref<1x888x49xf32, #tpu.memory_space<vmem>>, vector<1x888x49xf32>
    %1 = vector.shape_cast %0 : vector<1x888x49xf32> to vector<888x49xf32>
    %c0_2 = arith.constant 0 : index
    %c0_3 = arith.constant 0 : index
    %2 = vector.load %arg3[%c0_2, %c0_3] : memref<888x1xf32, #tpu.memory_space<vmem>>, vector<888x1xf32>
    %3 = vector.broadcast %2 : vector<888x1xf32> to vector<888x49xf32>
    %4 = arith.mulf %1, %3 : vector<888x49xf32>
    %5 = arith.truncf %4 : vector<888x49xf32> to vector<888x49xbf16>
    %c0_4 = arith.constant 0 : index
    %c0_5 = arith.constant 0 : index
    %6 = vector.load %arg4[%c0_4, %c0_5] : memref<448x888xbf16, #tpu.memory_space<vmem>>, vector<448x888xbf16>
    %cst = arith.constant dense<0.000000e+00> : vector<448x49xf32>
    %7 = tpu.matmul %6, %5, %cst {dimension_numbers = #tpu.dot_dimension_numbers<[1], [0], [0], [1], [0, 0, 1, 1], [], []>} : vector<448x888xbf16>, vector<888x49xbf16>, vector<448x49xf32> -> vector<448x49xf32>
    %c0_6 = arith.constant 0 : index
    %c0_7 = arith.constant 0 : index
    %c0_8 = arith.constant 0 : index
    %8 = vector.load %arg5[%c0_6, %c0_7, %c0_8] : memref<1x448x49xf32, #tpu.memory_space<vmem>>, vector<1x448x49xf32>
    %9 = vector.shape_cast %8 : vector<1x448x49xf32> to vector<448x49xf32>
    %10 = vector.shape_cast %7 : vector<448x49xf32> to vector<1x448x49xf32>
    tpu.vector_store %arg5[%c0_6, %c0_7, %c0_8], %10 {strides = array<i32>} : memref<1x448x49xf32, #tpu.memory_space<vmem>>, vector<1x448x49xf32>,
    return
  }
  func.func @transform_0(%arg0: i32, %arg1: i32) -> (i32, i32, i32) {
    %c0_i32 = arith.constant 0 : i32
    %c0_i32_0 = arith.constant 0 : i32
    %c0_i32_1 = arith.constant 0 : i32
    return %arg0, %c0_i32, %c0_i32_0 : i32, i32, i32
  }
  func.func @transform_1(%arg0: i32, %arg1: i32) -> (i32, i32) {
    %c0_i32 = arith.constant 0 : i32
    %c0_i32_0 = arith.constant 0 : i32
    %c0_i32_1 = arith.constant 0 : i32
    return %c0_i32, %c0_i32_0 : i32, i32
  }
  func.func @transform_2(%arg0: i32, %arg1: i32) -> (i32, i32) {
    %c0_i32 = arith.constant 0 : i32
    %c0_i32_0 = arith.constant 0 : i32
    return %arg1, %c0_i32 : i32, i32
  }
  func.func @transform_3(%arg0: i32, %arg1: i32) -> (i32, i32, i32) {
    %c0_i32 = arith.constant 0 : i32
    %c0_i32_0 = arith.constant 0 : i32
    return %arg0, %arg1, %c0_i32 : i32, i32, i32
  }
}

</mosaic_0001>

<bundles_post_ra>
// kernel: tpu_custom_call.1
= control target key start
LH: loop header
LB: loop body
LE: loop exit
PB: predicated region body
PF: predicated region fallthrough
CT: control target
= control target key end

     0   :  { %8 = vsyncpa [#allocation3], 0  ;;  %s6908_s0 = inlined_call_operand.vmem [shape: f32[1,888,49], index: 0, kind: input, shape index: {}]   ;;  %s6909_s1 = inlined_call_operand.vmem [shape: f32[888,1], index: 1, kind: input, shape index: {}]   ;;  %s6910_s2 = inlined_call_operand.hbm [shape: bf16[888,888], index: 2, kind: input, shape index: {}]   ;;  %s6911_s3 = inlined_call_operand.vmem [shape: f32[1,888,49], index: 3, kind: output, shape index: {}]  }
   0x1   :  { %10 = vsyncpa [#allocation3 + $0x1], 0  ;;  %s5170_s12 = smov 0   ;;  %s5172_s13 = smov 0  }
   0x2   :  { %s5174_s14 = smov 0   ;;  %s5176_s15 = smov 0  }
   0x3   :  { %s5178_s16 = smov 0   ;;  %s5180_s17 = smov 0  }
   0x4 LB: > { %s4037_s18 = sadd.s32 4294967295, %s5112_s17   ;;  %s25_s19 = sadd.s32 1, %s5108_s16  ;;  %s5112_s17 = sphi %s5180_s17, %s16_s17   ;;  %s5108_s16 = sphi %s5178_s16, %s6931_s16   ;;  %s5104_s15 = sphi %s5176_s15, %s6930_s15   ;;  %s5100_s14 = sphi %s5174_s14, %s6929_s14   ;;  %s5096_s13 = sphi %s5172_s13, %s6928_s13   ;;  %s5092_s12 = sphi %s5170_s12, %s6927_s12  }
   0x5   : > { %p26_p0 = scmp.ge.s32.totalorder %s25_s19, 2  ;;  %s82_s20 = sadd.s32 1, %s5100_s14 }
   0x6   : > { %p89_p1 = scmp.ne.s32.totalorder %s5100_s14, %s5096_s13  ;;  %p90_p2 = scmp.eq.s32.totalorder %s5112_s17, 0 }
   0x7   : > { %s6933_s19 = smov (%p26_p0, %s25_s19), 0  ;;  %p95_p4 = scmp.ne.s32.totalorder %s5096_s13, %s5092_s12 }
   0x8   : > { %p91_p3 = por %p90_p2, %p89_p1  ;;  %s79_s21 = ssub.s32 %s5108_s16, %s6933_s19 }
   0x9   : > { %p96_p5 = scmp.eq.s32.totalorder %s4037_s18, 0  ;;  %p80_p6 = scmp.eq.s32.totalorder %s79_s21, 0 }
   0xa   : > { %p121_p7 = scmp.eq.s32.totalorder %s4037_s18, 1  ;;  %p4041_p10 = scmp.ge.s32.totalorder %s5112_s17, 2 }
   0xb   : > { %p5209_p8 = por %p96_p5, %p95_p4 }
   0xc   : > { %s5214_s23 = scalar_select %p80_p6, %s5100_s14, %s82_s20  }
   0xd   : > { %p5216_p9 = por %p121_p7, %p89_p1  ;;  %154 = sbr.rel (%p4041_p10) target bundleno = 56 (0x38), region = 24 }
  0x14   : > { %157 = sbr.rel (!%p91_p3) target bundleno = 56 (0x38), region = 28  ;;  %s158_s25 = sand.u32 (%p91_p3), 1, %s5100_s14  }
  0x15   : > { %s163_s26 = smul.u32 (%p91_p3), 56, %s5108_s16  ;;  %s5226_s4 = scalar_lea.sflag (%p91_p3), [#allocation3], %s158_s25 }
  0x16   : > { %s4594_s27 = smul.u32 (%p91_p3), 1568, %s158_s25 }
  0x17   : > { %s164_s28 = ssub.s32 (%p91_p3), 111, %s163_s26 }
  0x18   : > { %p165_p11 = scmp.lt.s32.totalorder (%p91_p3), %s164_s28, 56  ;;  %s162_s5 = scalar_lea.vmem (%p91_p3), [#allocation2], %s4594_s27 }
  0x1b   : > { %s6935_s28 = smov (!%p165_p11, %s164_s28), 56 }
  0x1c   : > { %s5223_s29 = smul.u32 448, %s6935_s28 }
  0x1e   : > { %s170_s30 = ssub.s32 25088, %s5223_s29 }
  0x1f   : > { %171 = vsyncadd %s5226_s4, %s170_s30  ;;  %p4044_p12 = scmp.ne.s32.totalorder %s5223_s29, 0  ;;  %s4599_s6 = smul.u32 25088, %s5108_s16 }
  0x20   : > { %s177_s7 = sshll.u32 %s162_s5, 4  ;;  %s5006_s20 = scalar_lea.hbm %s6910_s2, 49728  ;;  %s5236_s7 = int_to_ptr.vmem [resolvable:$true] %s177_s7 }
  0x21   : > { %s5234_s10 = scalar_lea.hbm %s6910_s2, %s4599_s6 }
  0x22   : > { %s5002_s11 = scalar_lea.hbm %s5234_s10, %s5223_s29  ;;  %p5007_p2 = scmp.lt.u32.totalorder %s5234_s10, %s6910_s2 }
  0x23   : > { %p5003_p13 = scmp.ne.s32.totalorder %s5234_s10, %s5002_s11  ;;  %p5008_p3 = scmp.lt.u32.totalorder %s5006_s20, %s5002_s11 }
  0x24   : > { %p5010_p5 = scmp.lt.u32.totalorder %s5002_s11, %s5234_s10 }
  0x25   : > { %p5004_p0 = pnand %p5003_p13, %p4044_p12  ;;  %p5009_p4 = por %p5008_p3, %p5007_p2 }
  0x27   : > { %p5005_p1 = pneg %p5004_p0  ;;  %p5011_p6 = por %p5010_p5, %p5009_p4 }
  0x29   : > { %p5012_p7 = pnand %p5011_p6, %p5005_p1 }
  0x2b   : > { %5015 = shalt.err (!%p5012_p7)
}
  0x2c   : > { %s5016_s26 = scalar_lea.vmem %s5236_s7, %s5223_s29  ;;  %s5146_s27 = smov [#allocation2]  }
  0x2d   : > { %p5017_p10 = scmp.ne.s32.totalorder %s5236_s7, %s5016_s26  ;;  %s5020_s28 = sshll.u32 %s5146_s27, 4  ;;  %s5021_s28 = int_to_ptr.vmem [resolvable:$false] %s5020_s28 }
  0x2e   : > { %s5022_s30 = scalar_lea.vmem %s5021_s28, 50176  ;;  %p5023_p0 = scmp.lt.s32.totalorder %s5236_s7, %s5021_s28 }
  0x2f   : > { %p5018_p11 = pnand %p5017_p10, %p4044_p12  ;;  %p5024_p2 = scmp.lt.s32.totalorder %s5022_s30, %s5016_s26 }
  0x31   : > { %p5019_p13 = pneg %p5018_p11  ;;  %p5025_p3 = por %p5024_p2, %p5023_p0 }
  0x33   : > { %p5026_p4 = pnand %p5025_p3, %p5019_p13 }
  0x35   : > { %5029 = shalt.err (!%p5026_p4)
}
  0x36   : > { %s5147_s5 = smov 448   ;;  %s5148_s6 = smov 28  }
  0x37   : > { %183 = dma.hbm_to_vmem [thread:$0]  (%p4044_p12), %s5234_s10, %s5223_s29, %s5236_s7, %s5226_s4, %s5147_s5, %s5147_s5, %s5148_s6  }
  0x38 PF: > { %p4047_p1 = scmp.ge.s32.totalorder %s5112_s17, 1  ;;  %p185_p5 = scmp.lt.s32.totalorder %s5112_s17, 3 }
  0x3a   : > { %p186_p6 = pnand %p4047_p1, %p185_p5 }
  0x3c   : > { %189 = sbr.rel (%p186_p6) target bundleno = 1016 (0x3f8), region = 32 }
  0x43   : > { %s5266_s8 = sand.u32 1, %s5096_s13  }
  0x44   : > { %s4596_s9 = smul.u32 1568, %s5266_s8  ;;  %s192_s11 = scalar_lea.sflag [#allocation3], %s5266_s8 }
  0x46   : > { %s5270_s12 = scalar_lea.vmem [#allocation2], %s4596_s9 }
  0x47   : > { %5087 = dma.done.wait (%p5209_p8), %s192_s11, 25088  }
  0x48   : > { %5089 = vsyncadd (%p5209_p8), %s192_s11, 4294942208  ;;  %v5149_v0 = vmov 0   ;;  %v382_v1 = vld [vmem:[%s6909_s1 + $0x100] sm:$0xff]  ;;  %v383_v3 = vld [vmem:[%s6909_s1 + $0x108] sm:$0xff]  ;;  %vm2472_vm0 = vcmask 1043456   ;;  %vm2387_vm1 = vcmask 982016  }
  0x49   : > { %4717 = vset.pattern.permute.xlu1 %v5149_v0  ;;  %4716 = vset.pattern.permute.xlu0 %v5149_v0  ;;  %v350_v2 = vld [vmem:[%s6909_s1] sm:$0xff]  ;;  %v351_v4 = vld [vmem:[%s6909_s1 + $0x8] sm:$0xff]  ;;  %v384_v5 = vld [vmem:[%s6909_s1 + $0x110] sm:$0xff]  ;;  %vm3504_vm2 = vcmask 400384   ;;  %s4284_s10 = smul.u32 (%p5216_p9), 448, %s5104_s15 }
  0x4a   : > { %2476 = vmatprep.subr.bf16.mxu1 %v5149_v0  ;;  %2733 = vmatprep.subr.bf16.mxu0 %v5149_v0  ;;  %v385_v6 = vld [vmem:[%s6909_s1 + $0x118] sm:$0xff]  ;;  %v352_v7 = vld [vmem:[%s6909_s1 + $0x10] sm:$0xff]  ;;  %v386_v9 = vld [vmem:[%s6909_s1 + $0x120] sm:$0xff] }
  0x4b   : > { %623 = vperm.xlu0 %4716, %v382_v1   ;;  %463 = vperm.xlu1 %4717, %v350_v2   ;;  %v353_v8 = vld [vmem:[%s6909_s1 + $0x18] sm:$0xff]  ;;  %v387_v10 = vld [vmem:[%s6909_s1 + $0x128] sm:$0xff]  ;;  %v354_v11 = vld [vmem:[%s6909_s1 + $0x20] sm:$0xff]  ;;  %s6722_s21 = scalar_lea.vmem (%p5216_p9), %s6911_s3, %s4284_s10  }
  0x4c   : > { %v355_v12 = vld [vmem:[%s6909_s1 + $0x28] sm:$0xff]  ;;  %v388_v13 = vld [vmem:[%s6909_s1 + $0x130] sm:$0xff]  ;;  %v389_v14 = vld [vmem:[%s6909_s1 + $0x138] sm:$0xff] }
  0x4d   : > { %v356_v15 = vld [vmem:[%s6909_s1 + $0x30] sm:$0xff]  ;;  %v357_v16 = vld [vmem:[%s6909_s1 + $0x38] sm:$0xff]  ;;  %v390_v17 = vld [vmem:[%s6909_s1 + $0x140] sm:$0xff] }
  0x4e   : > { %v391_v18 = vld [vmem:[%s6909_s1 + $0x148] sm:$0xff]  ;;  %v358_v19 = vld [vmem:[%s6909_s1 + $0x40] sm:$0xff]  ;;  %v392_v21 = vld [vmem:[%s6909_s1 + $0x150] sm:$0xff] }
  0x4f   : > { %628 = vperm.xlu0 %4716, %v383_v3   ;;  %468 = vperm.xlu1 %4717, %v351_v4   ;;  %v359_v20 = vld [vmem:[%s6909_s1 + $0x48] sm:$0xff]  ;;  %v393_v22 = vld [vmem:[%s6909_s1 + $0x158] sm:$0xff]  ;;  %v360_v23 = vld [vmem:[%s6909_s1 + $0x50] sm:$0xff] }
  0x50   : > { %v361_v24 = vld [vmem:[%s6909_s1 + $0x58] sm:$0xff]  ;;  %v394_v25 = vld [vmem:[%s6909_s1 + $0x160] sm:$0xff]  ;;  %v395_v26 = vld [vmem:[%s6909_s1 + $0x168] sm:$0xff] }
  0x51   : > { %v362_v27 = vld [vmem:[%s6909_s1 + $0x60] sm:$0xff]  ;;  %v363_v28 = vld [vmem:[%s6909_s1 + $0x68] sm:$0xff]  ;;  %v396_v29 = vld [vmem:[%s6909_s1 + $0x170] sm:$0xff] }
  0x52   : > { %v397_v30 = vld [vmem:[%s6909_s1 + $0x178] sm:$0xff]  ;;  %v364_v31 = vld [vmem:[%s6909_s1 + $0x70] sm:$0xff]  ;;  %v398_v33 = vld [vmem:[%s6909_s1 + $0x180] sm:$0xff] }
  0x53   : > { %633 = vperm.xlu0 %4716, %v384_v5   ;;  %638 = vperm.xlu1 %4717, %v385_v6   ;;  %v365_v32 = vld [vmem:[%s6909_s1 + $0x78] sm:$0xff]  ;;  %v399_v34 = vld [vmem:[%s6909_s1 + $0x188] sm:$0xff]  ;;  %v366_v35 = vld [vmem:[%s6909_s1 + $0x80] sm:$0xff] }
  0x54   : > { %v367_v36 = vld [vmem:[%s6909_s1 + $0x88] sm:$0xff]  ;;  %v400_v37 = vld [vmem:[%s6909_s1 + $0x190] sm:$0xff]  ;;  %v401_v38 = vld [vmem:[%s6909_s1 + $0x198] sm:$0xff] }
  0x55   : > { %v368_v39 = vld [vmem:[%s6909_s1 + $0x90] sm:$0xff]  ;;  %v369_v40 = vld [vmem:[%s6909_s1 + $0x98] sm:$0xff]  ;;  %v402_v41 = vld [vmem:[%s6909_s1 + $0x1a0] sm:$0xff] }
  0x56   : > { %v403_v42 = vld [vmem:[%s6909_s1 + $0x1a8] sm:$0xff]  ;;  %v370_v43 = vld [vmem:[%s6909_s1 + $0xa0] sm:$0xff]  ;;  %v404_v45 = vld [vmem:[%s6909_s1 + $0x1b0] sm:$0xff] }
  0x57   : > { %473 = vperm.xlu0 %4716, %v352_v7   ;;  %478 = vperm.xlu1 %4717, %v353_v8   ;;  %v371_v44 = vld [vmem:[%s6909_s1 + $0xa8] sm:$0xff]  ;;  %v405_v46 = vld [vmem:[%s6909_s1 + $0x1b8] sm:$0xff]  ;;  %v372_v47 = vld [vmem:[%s6909_s1 + $0xb0] sm:$0xff] }
  0x58   : > { %v373_v48 = vld [vmem:[%s6909_s1 + $0xb8] sm:$0xff]  ;;  %v406_v49 = vld [vmem:[%s6909_s1 + $0x1c0] sm:$0xff]  ;;  %v407_v50 = vld [vmem:[%s6909_s1 + $0x1c8] sm:$0xff] }
  0x59   : > { %v374_v51 = vld [vmem:[%s6909_s1 + $0xc0] sm:$0xff]  ;;  %v375_v52 = vld [vmem:[%s6909_s1 + $0xc8] sm:$0xff]  ;;  %v408_v53 = vld [vmem:[%s6909_s1 + $0x1d0] sm:$0xff] }
  0x5a   : > { %v409_v54 = vld [vmem:[%s6909_s1 + $0x1d8] sm:$0xff]  ;;  %v376_v55 = vld [vmem:[%s6909_s1 + $0xd0] sm:$0xff]  ;;  %v410_v57 = vld [vmem:[%s6909_s1 + $0x1e0] sm:$0xff] }
  0x5b   : > { %643 = vperm.xlu0 %4716, %v386_v9   ;;  %648 = vperm.xlu1 %4717, %v387_v10   ;;  %v377_v56 = vld [vmem:[%s6909_s1 + $0xd8] sm:$0xff]  ;;  %v411_v58 = vld [vmem:[%s6909_s1 + $0x1e8] sm:$0xff]  ;;  %v378_v59 = vld [vmem:[%s6909_s1 + $0xe0] sm:$0xff] }
  0x5c   : > { %v379_v60 = vld [vmem:[%s6909_s1 + $0xe8] sm:$0xff]  ;;  %v412_v61 = vld [vmem:[%s6909_s1 + $0x1f0] sm:$0xff]  ;;  %v413_v62 = vld [vmem:[%s6909_s1 + $0x1f8] sm:$0xff] }
  0x5d   : > { %v380_v63 = vld [vmem:[%s6909_s1 + $0xf0] sm:$0xff]  ;;  %v381_v1 = vld [vmem:[%s6909_s1 + $0xf8] sm:$0xff]  ;;  %v414_v2 = vld [vmem:[%s6909_s1 + $0x200] sm:$0xff] }
  0x5e   : > { %v415_v3 = vld [vmem:[%s6909_s1 + $0x208] sm:$0xff]  ;;  %v271_v5 = vld [vmem:[%s6908_s0 + $0x100] sm:$0xff] }
  0x5f   : > { %483 = vperm.xlu0 %4716, %v354_v11   ;;  %488 = vperm.xlu1 %4717, %v355_v12   ;;  %v4720_v4 = vld [vmem:[%s5270_s12 + $0xc] ss:$28 sps:$4 sm:$0xff]   ;;  %v239_v8 = vld [vmem:[%s6908_s0] sm:$0xff]  ;;  %v416_v11 = vld [vmem:[%s6909_s1 + $0x210] sm:$0xff] }
  0x60   : > { %v272_v9 = vld [vmem:[%s6908_s0 + $0x108] sm:$0xff]  ;;  %2765 = vmatprep.mubr.bf16.mxu0 %v4720_v4  ;;  %v417_v12 = vld [vmem:[%s6909_s1 + $0x218] sm:$0xff] }
  0x61   : > { %v240_v10 = vld [vmem:[%s6908_s0 + $0x8] sm:$0xff]  ;;  %v246_v4 = vld [vmem:[%s6908_s0 + $0x38] sm:$0xff] }
  0x63   : > { %653 = vperm.xlu0 %4716, %v388_v13   ;;  %658 = vperm.xlu1 %4717, %v389_v14   ;;  %v4723_v13 = vld [vmem:[%s5270_s12 + $0x4] ss:$28 sps:$4 sm:$0xff]  }
  0x64   : > { %2508 = vmatprep.mubr.bf16.mxu1 %v4723_v13  ;;  %v280_v13 = vld [vmem:[%s6908_s0 + $0x148] sm:$0xff] }
  0x67   : > { %493 = vperm.xlu0 %4716, %v356_v15   ;;  %498 = vperm.xlu1 %4717, %v357_v16  }
  0x6b   : > { %663 = vperm.xlu0 %4716, %v390_v17   ;;  %668 = vperm.xlu1 %4717, %v391_v18   ;;  %v273_v17 = vld [vmem:[%s6908_s0 + $0x110] sm:$0xff]  ;;  %v274_v18 = vld [vmem:[%s6908_s0 + $0x118] sm:$0xff] }
  0x6f   : > { %503 = vperm.xlu0 %4716, %v358_v19   ;;  %508 = vperm.xlu1 %4717, %v359_v20  }
  0x73   : > { %673 = vperm.xlu0 %4716, %v392_v21   ;;  %678 = vperm.xlu1 %4717, %v393_v22   ;;  %v418_v22 = vld [vmem:[%s6909_s1 + $0x220] sm:$0xff] }
  0x77   : > { %513 = vperm.xlu0 %4716, %v360_v23   ;;  %518 = vperm.xlu1 %4717, %v361_v24   ;;  %v419_v23 = vld [vmem:[%s6909_s1 + $0x228] sm:$0xff] }
  0x7b   : > { %683 = vperm.xlu0 %4716, %v394_v25   ;;  %688 = vperm.xlu1 %4717, %v395_v26  }
  0x7f   : > { %523 = vperm.xlu0 %4716, %v362_v27   ;;  %528 = vperm.xlu1 %4717, %v363_v28  }
  0x83   : > { %693 = vperm.xlu0 %4716, %v396_v29   ;;  %698 = vperm.xlu1 %4717, %v397_v30   ;;  %v241_v30 = vld [vmem:[%s6908_s0 + $0x10] sm:$0xff] }
  0x87   : > { %533 = vperm.xlu0 %4716, %v364_v31   ;;  %538 = vperm.xlu1 %4717, %v365_v32   ;;  %v242_v31 = vld [vmem:[%s6908_s0 + $0x18] sm:$0xff]  ;;  %v420_v32 = vld [vmem:[%s6909_s1 + $0x230] sm:$0xff] }
  0x8b   : > { %703 = vperm.xlu0 %4716, %v398_v33   ;;  %708 = vperm.xlu1 %4717, %v399_v34   ;;  %v421_v33 = vld [vmem:[%s6909_s1 + $0x238] sm:$0xff] }
  0x8f   : > { %543 = vperm.xlu0 %4716, %v366_v35   ;;  %548 = vperm.xlu1 %4717, %v367_v36  }
  0x93   : > { %713 = vperm.xlu0 %4716, %v400_v37   ;;  %718 = vperm.xlu1 %4717, %v401_v38  }
  0x97   : > { %553 = vperm.xlu0 %4716, %v368_v39   ;;  %558 = vperm.xlu1 %4717, %v369_v40   ;;  %v275_v39 = vld [vmem:[%s6908_s0 + $0x120] sm:$0xff]  ;;  %v276_v40 = vld [vmem:[%s6908_s0 + $0x128] sm:$0xff] }
  0x9b   : > { %723 = vperm.xlu0 %4716, %v402_v41   ;;  %728 = vperm.xlu1 %4717, %v403_v42   ;;  %v422_v41 = vld [vmem:[%s6909_s1 + $0x240] sm:$0xff]  ;;  %v423_v42 = vld [vmem:[%s6909_s1 + $0x248] sm:$0xff] }
  0x9f   : > { %563 = vperm.xlu0 %4716, %v370_v43   ;;  %568 = vperm.xlu1 %4717, %v371_v44  }
  0xa3   : > { %733 = vperm.xlu0 %4716, %v404_v45   ;;  %738 = vperm.xlu1 %4717, %v405_v46  }
  0xa7   : > { %573 = vperm.xlu0 %4716, %v372_v47   ;;  %578 = vperm.xlu1 %4717, %v373_v48   ;;  %v243_v48 = vld [vmem:[%s6908_s0 + $0x20] sm:$0xff] }
  0xab   : > { %743 = vperm.xlu0 %4716, %v406_v49   ;;  %748 = vperm.xlu1 %4717, %v407_v50   ;;  %v244_v49 = vld [vmem:[%s6908_s0 + $0x28] sm:$0xff]  ;;  %v424_v50 = vld [vmem:[%s6909_s1 + $0x250] sm:$0xff] }
  0xaf   : > { %583 = vperm.xlu0 %4716, %v374_v51   ;;  %588 = vperm.xlu1 %4717, %v375_v52   ;;  %v425_v51 = vld [vmem:[%s6909_s1 + $0x258] sm:$0xff] }
  0xb3   : > { %753 = vperm.xlu0 %4716, %v408_v53   ;;  %758 = vperm.xlu1 %4717, %v409_v54  }
  0xb7   : > { %593 = vperm.xlu0 %4716, %v376_v55   ;;  %598 = vperm.xlu1 %4717, %v377_v56  }
  0xbb   : > { %763 = vperm.xlu0 %4716, %v410_v57   ;;  %768 = vperm.xlu1 %4717, %v411_v58   ;;  %v277_v57 = vld [vmem:[%s6908_s0 + $0x130] sm:$0xff]  ;;  %v278_v58 = vld [vmem:[%s6908_s0 + $0x138] sm:$0xff] }
  0xbf   : > { %603 = vperm.xlu0 %4716, %v378_v59   ;;  %608 = vperm.xlu1 %4717, %v379_v60   ;;  %v426_v59 = vld [vmem:[%s6909_s1 + $0x260] sm:$0xff]  ;;  %v427_v60 = vld [vmem:[%s6909_s1 + $0x268] sm:$0xff] }
  0xc3   : > { %773 = vperm.xlu0 %4716, %v412_v61   ;;  %778 = vperm.xlu1 %4717, %v413_v62  }
  0xc7   : > { %613 = vperm.xlu0 %4716, %v380_v63   ;;  %618 = vperm.xlu1 %4717, %v381_v1  }
  0xca   : > { %v624_v6 = vpop.permute.xlu0 %623  ;;  %v464_v7 = vpop.permute.xlu1 %463 }
  0xcb   : > { %783 = vperm.xlu0 %4716, %v414_v2   ;;  %788 = vperm.xlu1 %4717, %v415_v3   ;;  %v1048_v14 = vmul.f32 %v624_v6, %v271_v5  ;;  %v1016_v19 = vmul.f32 %v464_v7, %v239_v8  ;;  %v245_v3 = vld [vmem:[%s6908_s0 + $0x30] sm:$0xff]  ;;  %v429_v6 = vld [vmem:[%s6909_s1 + $0x278] sm:$0xff] }
  0xcc   : > { %v428_v5 = vld [vmem:[%s6909_s1 + $0x270] sm:$0xff] }
  0xce   : > { %v629_v15 = vpop.permute.xlu0 %628  ;;  %v469_v16 = vpop.permute.xlu1 %468 }
  0xcf   : > { %v1049_v20 = vmul.f32 %v629_v15, %v272_v9  ;;  %v1017_v21 = vmul.f32 %v469_v16, %v240_v10  ;;  %793 = vperm.xlu0 %4716, %v416_v11   ;;  %798 = vperm.xlu1 %4717, %v417_v12   ;;  %v279_v12 = vld [vmem:[%s6908_s0 + $0x140] sm:$0xff]  ;;  %v431_v15 = vld [vmem:[%s6909_s1 + $0x288] sm:$0xff] }
  0xd1   : > { %v1127_v24 = vpack.c.bf16 %v1017_v21, %v1016_v19  ;;  %v5510_v25 = vpack.c.bf16 %v1049_v20, %v1048_v14  ;;  %v430_v14 = vld [vmem:[%s6909_s1 + $0x280] sm:$0xff] }
  0xd2   : > { %v634_v26 = vpop.permute.xlu0 %633  ;;  %v639_v27 = vpop.permute.xlu1 %638  ;;  %v247_v21 = vld [vmem:[%s6908_s0 + $0x40] sm:$0xff] }
  0xd3   : > { %v1050_v28 = vmul.f32 %v634_v26, %v273_v17  ;;  %v1051_v29 = vmul.f32 %v639_v27, %v274_v18  ;;  %803 = vperm.xlu0 %4716, %v418_v22   ;;  %808 = vperm.xlu1 %4717, %v419_v23   ;;  %v248_v22 = vld [vmem:[%s6908_s0 + $0x48] sm:$0xff]  ;;  %v432_v23 = vld [vmem:[%s6909_s1 + $0x290] sm:$0xff] }
  0xd4   : > { %2477 = vmatpush1.bf16.msra.mxu1 %v1127_v24  ;;  %2734 = vmatpush1.bf16.msra.mxu0 %v5510_v25  ;;  %v433_v24 = vld [vmem:[%s6909_s1 + $0x298] sm:$0xff] }
  0xd5   : > { %v5525_v34 = vpack.c.bf16 %v1051_v29, %v1050_v28  ;;  %2735 = vmatprep.subr.bf16.mxu0 %v5149_v0  ;;  %2478 = vmatprep.subr.bf16.mxu1 %v5149_v0 }
  0xd6   : > { %v474_v35 = vpop.permute.xlu0 %473  ;;  %v479_v36 = vpop.permute.xlu1 %478 }
  0xd7   : > { %v1018_v37 = vmul.f32 %v474_v35, %v241_v30  ;;  %v1019_v38 = vmul.f32 %v479_v36, %v242_v31  ;;  %813 = vperm.xlu0 %4716, %v420_v32   ;;  %818 = vperm.xlu1 %4717, %v421_v33   ;;  %v281_v31 = vld [vmem:[%s6908_s0 + $0x150] sm:$0xff]  ;;  %v282_v32 = vld [vmem:[%s6908_s0 + $0x158] sm:$0xff]  ;;  %v434_v33 = vld [vmem:[%s6909_s1 + $0x2a0] sm:$0xff] }
  0xd8   : > { %2736 = vmatpush1.bf16.msra.mxu0 %v5525_v34  ;;  %v435_v35 = vld [vmem:[%s6909_s1 + $0x2a8] sm:$0xff] }
  0xd9   : > { %v1128_v43 = vpack.c.bf16 %v1019_v38, %v1018_v37  ;;  %2737 = vmatprep.subr.bf16.mxu0 %v5149_v0 }
  0xda   : > { %v644_v44 = vpop.permute.xlu0 %643  ;;  %v649_v45 = vpop.permute.xlu1 %648 }
  0xdb   : > { %v1052_v46 = vmul.f32 %v644_v44, %v275_v39  ;;  %v1053_v47 = vmul.f32 %v649_v45, %v276_v40  ;;  %823 = vperm.xlu0 %4716, %v422_v41   ;;  %828 = vperm.xlu1 %4717, %v423_v42   ;;  %v249_v41 = vld [vmem:[%s6908_s0 + $0x50] sm:$0xff]  ;;  %v250_v42 = vld [vmem:[%s6908_s0 + $0x58] sm:$0xff] }
  0xdc   : > { %2479 = vmatpush1.bf16.msra.mxu1 %v1128_v43  ;;  %v436_v43 = vld [vmem:[%s6909_s1 + $0x2b0] sm:$0xff]  ;;  %v437_v44 = vld [vmem:[%s6909_s1 + $0x2b8] sm:$0xff] }
  0xdd   : > { %v5555_v52 = vpack.c.bf16 %v1053_v47, %v1052_v46  ;;  %2480 = vmatprep.subr.bf16.mxu1 %v5149_v0 }
  0xde   : > { %v484_v53 = vpop.permute.xlu0 %483  ;;  %v489_v54 = vpop.permute.xlu1 %488 }
  0xdf   : > { %v1020_v55 = vmul.f32 %v484_v53, %v243_v48  ;;  %v1021_v56 = vmul.f32 %v489_v54, %v244_v49  ;;  %833 = vperm.xlu0 %4716, %v424_v50   ;;  %838 = vperm.xlu1 %4717, %v425_v51   ;;  %v283_v50 = vld [vmem:[%s6908_s0 + $0x160] sm:$0xff]  ;;  %v284_v51 = vld [vmem:[%s6908_s0 + $0x168] sm:$0xff] }
  0xe0   : > { %2738 = vmatpush1.bf16.msra.mxu0 %v5555_v52  ;;  %v438_v53 = vld [vmem:[%s6909_s1 + $0x2c0] sm:$0xff]  ;;  %v439_v54 = vld [vmem:[%s6909_s1 + $0x2c8] sm:$0xff] }
  0xe1   : > { %v1129_v61 = vpack.c.bf16 %v1021_v56, %v1020_v55  ;;  %2739 = vmatprep.subr.bf16.mxu0 %v5149_v0 }
  0xe2   : > { %v654_v62 = vpop.permute.xlu0 %653  ;;  %v659_v63 = vpop.permute.xlu1 %658 }
  0xe3   : > { %v1054_v1 = vmul.f32 %v654_v62, %v277_v57  ;;  %v1055_v2 = vmul.f32 %v659_v63, %v278_v58  ;;  %843 = vperm.xlu0 %4716, %v426_v59   ;;  %848 = vperm.xlu1 %4717, %v427_v60   ;;  %v251_v60 = vld [vmem:[%s6908_s0 + $0x60] sm:$0xff]  ;;  %v440_v62 = vld [vmem:[%s6909_s1 + $0x2d0] sm:$0xff]  ;;  %v441_v63 = vld [vmem:[%s6909_s1 + $0x2d8] sm:$0xff] }
  0xe4   : > { %2481 = vmatpush1.bf16.msra.mxu1 %v1129_v61  ;;  %v252_v61 = vld [vmem:[%s6908_s0 + $0x68] sm:$0xff] }
  0xe5   : > { %v5584_v7 = vpack.c.bf16 %v1055_v2, %v1054_v1  ;;  %2482 = vmatprep.subr.bf16.mxu1 %v5149_v0 }
  0xe6   : > { %v494_v8 = vpop.permute.xlu0 %493  ;;  %v499_v9 = vpop.permute.xlu1 %498 }
  0xe7   : > { %v1022_v10 = vmul.f32 %v494_v8, %v245_v3  ;;  %v1023_v11 = vmul.f32 %v499_v9, %v246_v4  ;;  %853 = vperm.xlu0 %4716, %v428_v5   ;;  %858 = vperm.xlu1 %4717, %v429_v6   ;;  %v285_v6 = vld [vmem:[%s6908_s0 + $0x170] sm:$0xff]  ;;  %v286_v8 = vld [vmem:[%s6908_s0 + $0x178] sm:$0xff]  ;;  %v442_v9 = vld [vmem:[%s6909_s1 + $0x2e0] sm:$0xff] }
  0xe8   : > { %2740 = vmatpush1.bf16.msra.mxu0 %v5584_v7 }
  0xe9   : > { %v1130_v16 = vpack.c.bf16 %v1023_v11, %v1022_v10  ;;  %2741 = vmatprep.subr.bf16.mxu0 %v5149_v0  ;;  %v443_v10 = vld [vmem:[%s6909_s1 + $0x2e8] sm:$0xff] }
  0xea   : > { %v664_v17 = vpop.permute.xlu0 %663  ;;  %v669_v18 = vpop.permute.xlu1 %668 }
  0xeb   : > { %v1056_v19 = vmul.f32 %v664_v17, %v279_v12  ;;  %v1057_v20 = vmul.f32 %v669_v18, %v280_v13  ;;  %863 = vperm.xlu0 %4716, %v430_v14   ;;  %868 = vperm.xlu1 %4717, %v431_v15   ;;  %v254_v17 = vld [vmem:[%s6908_s0 + $0x78] sm:$0xff]  ;;  %v444_v18 = vld [vmem:[%s6909_s1 + $0x2f0] sm:$0xff] }
  0xec   : > { %2483 = vmatpush1.bf16.msra.mxu1 %v1130_v16  ;;  %v253_v16 = vld [vmem:[%s6908_s0 + $0x70] sm:$0xff] }
  0xed   : > { %v5613_v26 = vpack.c.bf16 %v1057_v20, %v1056_v19  ;;  %2484 = vmatprep.subr.bf16.mxu1 %v5149_v0  ;;  %v445_v19 = vld [vmem:[%s6909_s1 + $0x2f8] sm:$0xff] }
  0xee   : > { %v504_v27 = vpop.permute.xlu0 %503  ;;  %v509_v28 = vpop.permute.xlu1 %508 }
  0xef   : > { %v1024_v29 = vmul.f32 %v504_v27, %v247_v21  ;;  %v1025_v30 = vmul.f32 %v509_v28, %v248_v22  ;;  %873 = vperm.xlu0 %4716, %v432_v23   ;;  %878 = vperm.xlu1 %4717, %v433_v24   ;;  %v287_v27 = vld [vmem:[%s6908_s0 + $0x180] sm:$0xff]  ;;  %v288_v28 = vld [vmem:[%s6908_s0 + $0x188] sm:$0xff] }
  0xf0   : > { %2742 = vmatpush1.bf16.msra.mxu0 %v5613_v26 }
  0xf1   : > { %v1131_v36 = vpack.c.bf16 %v1025_v30, %v1024_v29  ;;  %2743 = vmatprep.subr.bf16.mxu0 %v5149_v0  ;;  %v446_v29 = vld [vmem:[%s6909_s1 + $0x300] sm:$0xff]  ;;  %v447_v30 = vld [vmem:[%s6909_s1 + $0x308] sm:$0xff] }
  0xf2   : > { %v674_v37 = vpop.permute.xlu0 %673  ;;  %v679_v38 = vpop.permute.xlu1 %678 }
  0xf3   : > { %v1058_v39 = vmul.f32 %v674_v37, %v281_v31  ;;  %v1059_v40 = vmul.f32 %v679_v38, %v282_v32  ;;  %883 = vperm.xlu0 %4716, %v434_v33   ;;  %888 = vperm.xlu1 %4717, %v435_v35   ;;  %v255_v37 = vld [vmem:[%s6908_s0 + $0x80] sm:$0xff]  ;;  %v256_v38 = vld [vmem:[%s6908_s0 + $0x88] sm:$0xff] }
  0xf4   : > { %2485 = vmatpush1.bf16.msra.mxu1 %v1131_v36 }
  0xf5   : > { %v5642_v45 = vpack.c.bf16 %v1059_v40, %v1058_v39  ;;  %2486 = vmatprep.subr.bf16.mxu1 %v5149_v0  ;;  %v448_v39 = vld [vmem:[%s6909_s1 + $0x310] sm:$0xff]  ;;  %v449_v40 = vld [vmem:[%s6909_s1 + $0x318] sm:$0xff] }
  0xf6   : > { %v514_v46 = vpop.permute.xlu0 %513  ;;  %v519_v47 = vpop.permute.xlu1 %518 }
  0xf7   : > { %v1026_v48 = vmul.f32 %v514_v46, %v249_v41  ;;  %v1027_v49 = vmul.f32 %v519_v47, %v250_v42  ;;  %893 = vperm.xlu0 %4716, %v436_v43   ;;  %898 = vperm.xlu1 %4717, %v437_v44   ;;  %v289_v47 = vld [vmem:[%s6908_s0 + $0x190] sm:$0xff] }
  0xf8   : > { %2744 = vmatpush1.bf16.msra.mxu0 %v5642_v45 }
  0xf9   : > { %v1132_v55 = vpack.c.bf16 %v1027_v49, %v1026_v48  ;;  %2745 = vmatprep.subr.bf16.mxu0 %v5149_v0  ;;  %v290_v48 = vld [vmem:[%s6908_s0 + $0x198] sm:$0xff]  ;;  %v450_v49 = vld [vmem:[%s6909_s1 + $0x320] sm:$0xff] }
  0xfa   : > { %v684_v56 = vpop.permute.xlu0 %683  ;;  %v689_v57 = vpop.permute.xlu1 %688 }
  0xfb   : > { %v1060_v58 = vmul.f32 %v684_v56, %v283_v50  ;;  %v1061_v59 = vmul.f32 %v689_v57, %v284_v51  ;;  %903 = vperm.xlu0 %4716, %v438_v53   ;;  %908 = vperm.xlu1 %4717, %v439_v54   ;;  %v451_v50 = vld [vmem:[%s6909_s1 + $0x328] sm:$0xff]  ;;  %v257_v57 = vld [vmem:[%s6908_s0 + $0x90] sm:$0xff] }
  0xfc   : > { %2487 = vmatpush1.bf16.msra.mxu1 %v1132_v55 }
  0xfd   : > { %v5671_v1 = vpack.c.bf16 %v1061_v59, %v1060_v58  ;;  %2488 = vmatprep.subr.bf16.mxu1 %v5149_v0  ;;  %v258_v58 = vld [vmem:[%s6908_s0 + $0x98] sm:$0xff]  ;;  %v452_v59 = vld [vmem:[%s6909_s1 + $0x330] sm:$0xff] }
  0xfe   : > { %v524_v2 = vpop.permute.xlu0 %523  ;;  %v529_v3 = vpop.permute.xlu1 %528 }
  0xff   : > { %v1028_v4 = vmul.f32 %v524_v2, %v251_v60  ;;  %v1029_v5 = vmul.f32 %v529_v3, %v252_v61  ;;  %913 = vperm.xlu0 %4716, %v440_v62   ;;  %918 = vperm.xlu1 %4717, %v441_v63   ;;  %v453_v60 = vld [vmem:[%s6909_s1 + $0x338] sm:$0xff] }
 0x100   : > { %2746 = vmatpush1.bf16.msra.mxu0 %v5671_v1 }
 0x101   : > { %v1133_v11 = vpack.c.bf16 %v1029_v5, %v1028_v4  ;;  %2747 = vmatprep.subr.bf16.mxu0 %v5149_v0  ;;  %v291_v4 = vld [vmem:[%s6908_s0 + $0x1a0] sm:$0xff]  ;;  %v292_v5 = vld [vmem:[%s6908_s0 + $0x1a8] sm:$0xff] }
 0x102   : > { %v694_v12 = vpop.permute.xlu0 %693  ;;  %v699_v13 = vpop.permute.xlu1 %698 }
 0x103   : > { %v1062_v14 = vmul.f32 %v694_v12, %v285_v6  ;;  %v1063_v15 = vmul.f32 %v699_v13, %v286_v8  ;;  %923 = vperm.xlu0 %4716, %v442_v9   ;;  %928 = vperm.xlu1 %4717, %v443_v10   ;;  %v454_v6 = vld [vmem:[%s6909_s1 + $0x340] sm:$0xff]  ;;  %v455_v8 = vld [vmem:[%s6909_s1 + $0x348] sm:$0xff] }
 0x104   : > { %2489 = vmatpush1.bf16.msra.mxu1 %v1133_v11 }
 0x105   : > { %v5700_v20 = vpack.c.bf16 %v1063_v15, %v1062_v14  ;;  %2490 = vmatprep.subr.bf16.mxu1 %v5149_v0  ;;  %v259_v14 = vld [vmem:[%s6908_s0 + $0xa0] sm:$0xff]  ;;  %v260_v15 = vld [vmem:[%s6908_s0 + $0xa8] sm:$0xff] }
 0x106   : > { %v534_v21 = vpop.permute.xlu0 %533  ;;  %v539_v22 = vpop.permute.xlu1 %538 }
 0x107   : > { %v1030_v23 = vmul.f32 %v534_v21, %v253_v16  ;;  %v1031_v24 = vmul.f32 %v539_v22, %v254_v17  ;;  %933 = vperm.xlu0 %4716, %v444_v18   ;;  %938 = vperm.xlu1 %4717, %v445_v19   ;;  %v456_v16 = vld [vmem:[%s6909_s1 + $0x350] sm:$0xff]  ;;  %v457_v17 = vld [vmem:[%s6909_s1 + $0x358] sm:$0xff] }
 0x108   : > { %2748 = vmatpush1.bf16.msra.mxu0 %v5700_v20 }
 0x109   : > { %v1134_v31 = vpack.c.bf16 %v1031_v24, %v1030_v23  ;;  %2749 = vmatprep.subr.bf16.mxu0 %v5149_v0  ;;  %v293_v24 = vld [vmem:[%s6908_s0 + $0x1b0] sm:$0xff] }
 0x10a   : > { %v704_v32 = vpop.permute.xlu0 %703  ;;  %v709_v33 = vpop.permute.xlu1 %708 }
 0x10b   : > { %v1064_v35 = vmul.f32 %v704_v32, %v287_v27  ;;  %v1065_v36 = vmul.f32 %v709_v33, %v288_v28  ;;  %943 = vperm.xlu0 %4716, %v446_v29   ;;  %948 = vperm.xlu1 %4717, %v447_v30   ;;  %v294_v27 = vld [vmem:[%s6908_s0 + $0x1b8] sm:$0xff]  ;;  %v458_v28 = vld [vmem:[%s6909_s1 + $0x360] sm:$0xff]  ;;  %v459_v29 = vld [vmem:[%s6909_s1 + $0x368] sm:$0xff] }
 0x10c   : > { %2491 = vmatpush1.bf16.msra.mxu1 %v1134_v31 }
 0x10d   : > { %v5729_v41 = vpack.c.bf16 %v1065_v36, %v1064_v35  ;;  %2492 = vmatprep.subr.bf16.mxu1 %v5149_v0  ;;  %v261_v36 = vld [vmem:[%s6908_s0 + $0xb0] sm:$0xff] }
 0x10e   : > { %v544_v42 = vpop.permute.xlu0 %543  ;;  %v549_v43 = vpop.permute.xlu1 %548 }
 0x10f   : > { %v1032_v44 = vmul.f32 %v544_v42, %v255_v37  ;;  %v1033_v46 = vmul.f32 %v549_v43, %v256_v38  ;;  %953 = vperm.xlu0 %4716, %v448_v39   ;;  %958 = vperm.xlu1 %4717, %v449_v40   ;;  %v262_v37 = vld [vmem:[%s6908_s0 + $0xb8] sm:$0xff]  ;;  %v460_v38 = vld [vmem:[%s6909_s1 + $0x370] sm:$0xff] }
 0x110   : > { %2750 = vmatpush1.bf16.msra.mxu0 %v5729_v41 }
 0x111   : > { %v1135_v51 = vpack.c.bf16 %v1033_v46, %v1032_v44  ;;  %2751 = vmatprep.subr.bf16.mxu0 %v5149_v0  ;;  %v295_v46 = vld [vmem:[%s6908_s0 + $0x1c0] sm:$0xff] }
 0x112   : > { %v714_v53 = vpop.permute.xlu0 %713  ;;  %v719_v54 = vpop.permute.xlu1 %718 }
 0x113   : > { %v1066_v55 = vmul.f32 %v714_v53, %v289_v47  ;;  %v1067_v56 = vmul.f32 %v719_v54, %v290_v48  ;;  %963 = vperm.xlu0 %4716, %v450_v49   ;;  %968 = vperm.xlu1 %4717, %v451_v50   ;;  %v296_v47 = vld [vmem:[%s6908_s0 + $0x1c8] sm:$0xff]  ;;  %v263_v54 = vld [vmem:[%s6908_s0 + $0xc0] sm:$0xff] }
 0x114   : > { %2493 = vmatpush1.bf16.msra.mxu1 %v1135_v51 }
 0x115   : > { %v5758_v61 = vpack.c.bf16 %v1067_v56, %v1066_v55  ;;  %2494 = vmatprep.subr.bf16.mxu1 %v5149_v0  ;;  %v264_v55 = vld [vmem:[%s6908_s0 + $0xc8] sm:$0xff] }
 0x116   : > { %v554_v62 = vpop.permute.xlu0 %553  ;;  %v559_v63 = vpop.permute.xlu1 %558 }
 0x117   : > { %v1034_v2 = vmul.f32 %v554_v62, %v257_v57  ;;  %v1035_v3 = vmul.f32 %v559_v63, %v258_v58  ;;  %973 = vperm.xlu0 %4716, %v452_v59   ;;  %978 = vperm.xlu1 %4717, %v453_v60   ;;  %v297_v62 = vld [vmem:[%s6908_s0 + $0x1d0] sm:$0xff]  ;;  %v298_v63 = vld [vmem:[%s6908_s0 + $0x1d8] sm:$0xff] }
 0x118   : > { %2752 = vmatpush1.bf16.msra.mxu0 %v5758_v61 }
 0x119   : > { %v1136_v9 = vpack.c.bf16 %v1035_v3, %v1034_v2  ;;  %2753 = vmatprep.subr.bf16.mxu0 %v5149_v0 }
 0x11a   : > { %v724_v10 = vpop.permute.xlu0 %723  ;;  %v729_v11 = vpop.permute.xlu1 %728 }
 0x11b   : > { %v1068_v12 = vmul.f32 %v724_v10, %v291_v4  ;;  %v1069_v13 = vmul.f32 %v729_v11, %v292_v5  ;;  %983 = vperm.xlu0 %4716, %v454_v6   ;;  %988 = vperm.xlu1 %4717, %v455_v8   ;;  %v265_v8 = vld [vmem:[%s6908_s0 + $0xd0] sm:$0xff] }
 0x11c   : > { %2495 = vmatpush1.bf16.msra.mxu1 %v1136_v9  ;;  %v266_v9 = vld [vmem:[%s6908_s0 + $0xd8] sm:$0xff] }
 0x11d   : > { %v5787_v18 = vpack.c.bf16 %v1069_v13, %v1068_v12  ;;  %2496 = vmatprep.subr.bf16.mxu1 %v5149_v0 }
 0x11e   : > { %v564_v19 = vpop.permute.xlu0 %563  ;;  %v569_v21 = vpop.permute.xlu1 %568 }
 0x11f   : > { %v1036_v22 = vmul.f32 %v564_v19, %v259_v14  ;;  %v1037_v23 = vmul.f32 %v569_v21, %v260_v15  ;;  %993 = vperm.xlu0 %4716, %v456_v16   ;;  %998 = vperm.xlu1 %4717, %v457_v17   ;;  %v299_v15 = vld [vmem:[%s6908_s0 + $0x1e0] sm:$0xff]  ;;  %v300_v16 = vld [vmem:[%s6908_s0 + $0x1e8] sm:$0xff] }
 0x120   : > { %2754 = vmatpush1.bf16.msra.mxu0 %v5787_v18 }
 0x121   : > { %v1137_v30 = vpack.c.bf16 %v1037_v23, %v1036_v22  ;;  %2755 = vmatprep.subr.bf16.mxu0 %v5149_v0 }
 0x122   : > { %v734_v31 = vpop.permute.xlu0 %733  ;;  %v739_v32 = vpop.permute.xlu1 %738 }
 0x123   : > { %v1070_v33 = vmul.f32 %v734_v31, %v293_v24  ;;  %v1071_v35 = vmul.f32 %v739_v32, %v294_v27  ;;  %1003 = vperm.xlu0 %4716, %v458_v28   ;;  %1008 = vperm.xlu1 %4717, %v459_v29   ;;  %v267_v24 = vld [vmem:[%s6908_s0 + $0xe0] sm:$0xff]  ;;  %v268_v27 = vld [vmem:[%s6908_s0 + $0xe8] sm:$0xff] }
 0x124   : > { %2497 = vmatpush1.bf16.msra.mxu1 %v1137_v30 }
 0x125   : > { %v5813_v39 = vpack.c.bf16 %v1071_v35, %v1070_v33  ;;  %2498 = vmatprep.subr.bf16.mxu1 %v5149_v0  ;;  %v301_v33 = vld [vmem:[%s6908_s0 + $0x1f0] sm:$0xff]  ;;  %v302_v35 = vld [vmem:[%s6908_s0 + $0x1f8] sm:$0xff] }
 0x126   : > { %v574_v40 = vpop.permute.xlu0 %573  ;;  %v579_v42 = vpop.permute.xlu1 %578 }
 0x127   : > { %v1038_v43 = vmul.f32 %v574_v40, %v261_v36  ;;  %v1039_v44 = vmul.f32 %v579_v42, %v262_v37  ;;  %1013 = vperm.xlu0 %4716, %v460_v38   ;;  %2756 = vmatpush1.bf16.msra.mxu0 %v5813_v39 }
 0x128   : > { %2757 = vmatprep.subr.bf16.mxu0 %v5149_v0 }
 0x129   : > { %v1138_v48 = vpack.c.bf16 %v1039_v44, %v1038_v43  ;;  %v269_v43 = vld [vmem:[%s6908_s0 + $0xf0] sm:$0xff]  ;;  %v270_v44 = vld [vmem:[%s6908_s0 + $0xf8] sm:$0xff] }
 0x12a   : > { %v744_v49 = vpop.permute.xlu0 %743  ;;  %v749_v50 = vpop.permute.xlu1 %748 }
 0x12b   : > { %v1072_v51 = vmul.f32 %v744_v49, %v295_v46  ;;  %v1073_v53 = vmul.f32 %v749_v50, %v296_v47  ;;  %2499 = vmatpush1.bf16.msra.mxu1 %v1138_v48  ;;  %v4718_v49 = vld [vmem:[%s5270_s12 + $0x8] ss:$28 sps:$4 sm:$0xff]  }
 0x12c   : > { %2500 = vmatprep.subr.bf16.mxu1 %v5149_v0 }
 0x12d   : > { %v5831_v56 = vpack.c.bf16 %v1073_v53, %v1072_v51  ;;  %v4724_v53 = vld [vmem:[%s5270_s12 + $0x44] ss:$28 sps:$4 sm:$0xff]  }
 0x12e   : > { %v584_v57 = vpop.permute.xlu0 %583  ;;  %v589_v58 = vpop.permute.xlu1 %588 }
 0x12f   : > { %v1040_v59 = vmul.f32 %v584_v57, %v263_v54  ;;  %v1041_v60 = vmul.f32 %v589_v58, %v264_v55  ;;  %2758 = vmatpush1.bf16.msra.mxu0 %v5831_v56  ;;  %v303_v54 = vld [vmem:[%s6908_s0 + $0x200] sm:$0xff]  ;;  %v304_v55 = vld [vmem:[%s6908_s0 + $0x208] sm:$0xff] }
 0x130   : > { %2759 = vmatprep.subr.bf16.mxu0 %v5149_v0 }
 0x131   : > { %v1139_v2 = vpack.c.bf16 %v1041_v60, %v1040_v59  ;;  %v4721_v60 = vld [vmem:[%s5270_s12] ss:$28 sps:$4 sm:$0xff]  }
 0x132   : > { %v754_v3 = vpop.permute.xlu0 %753  ;;  %v759_v4 = vpop.permute.xlu1 %758 }
 0x133   : > { %v1074_v5 = vmul.f32 %v754_v3, %v297_v62  ;;  %v1075_v6 = vmul.f32 %v759_v4, %v298_v63  ;;  %2501 = vmatpush1.bf16.msra.mxu1 %v1139_v2  ;;  %v305_v2 = vld [vmem:[%s6908_s0 + $0x210] sm:$0xff]  ;;  %v306_v3 = vld [vmem:[%s6908_s0 + $0x218] sm:$0xff] }
 0x134   : > { %2502 = vmatprep.subr.bf16.mxu1 %v5149_v0 }
 0x135   : > { %v5848_v10 = vpack.c.bf16 %v1075_v6, %v1074_v5  ;;  %v4727_v5 = vld [vmem:[%s5270_s12 + $0x3c] ss:$28 sps:$4 sm:$0xff]  }
 0x136   : > { %v594_v11 = vpop.permute.xlu0 %593  ;;  %v599_v12 = vpop.permute.xlu1 %598 }
 0x137   : > { %v1042_v13 = vmul.f32 %v594_v11, %v265_v8  ;;  %v1043_v14 = vmul.f32 %v599_v12, %v266_v9  ;;  %2760 = vmatpush1.bf16.msra.mxu0 %v5848_v10  ;;  %v4726_v9 = vld [vmem:[%s5270_s12 + $0x40] ss:$28 sps:$4 sm:$0xff]  }
 0x138   : > { %2761 = vmatprep.subr.bf16.mxu0 %v5149_v0 }
 0x139   : > { %v1140_v17 = vpack.c.bf16 %v1043_v14, %v1042_v13  ;;  %v307_v13 = vld [vmem:[%s6908_s0 + $0x220] sm:$0xff]  ;;  %v308_v14 = vld [vmem:[%s6908_s0 + $0x228] sm:$0xff] }
 0x13a   : > { %v764_v19 = vpop.permute.xlu0 %763  ;;  %v769_v21 = vpop.permute.xlu1 %768 }
 0x13b   : > { %v1076_v22 = vmul.f32 %v764_v19, %v299_v15  ;;  %v1077_v23 = vmul.f32 %v769_v21, %v300_v16  ;;  %2503 = vmatpush1.bf16.msra.mxu1 %v1140_v17  ;;  %v4730_v16 = vld [vmem:[%s5270_s12 + $0x7c] ss:$28 sps:$4 sm:$0xff]  }
 0x13c   : > { %2504 = vmatprep.subr.bf16.mxu1 %v5149_v0 }
 0x13d   : > { %v5865_v28 = vpack.c.bf16 %v1077_v23, %v1076_v22  ;;  %v309_v23 = vld [vmem:[%s6908_s0 + $0x230] sm:$0xff] }
 0x13e   : > { %v604_v29 = vpop.permute.xlu0 %603  ;;  %v609_v30 = vpop.permute.xlu1 %608 }
 0x13f   : > { %v1044_v31 = vmul.f32 %v604_v29, %v267_v24  ;;  %v1045_v32 = vmul.f32 %v609_v30, %v268_v27  ;;  %2762 = vmatpush1.bf16.msra.mxu0 %v5865_v28  ;;  %v310_v24 = vld [vmem:[%s6908_s0 + $0x238] sm:$0xff]  ;;  %v4733_v29 = vld [vmem:[%s5270_s12 + $0x74] ss:$28 sps:$4 sm:$0xff]  }
 0x140   : > { %2763 = vmatprep.subr.bf16.mxu0 %v5149_v0 }
 0x141   : > { %v1141_v36 = vpack.c.bf16 %v1045_v32, %v1044_v31 }
 0x142   : > { %v774_v37 = vpop.permute.xlu0 %773  ;;  %v779_v38 = vpop.permute.xlu1 %778 }
 0x143   : > { %v1078_v40 = vmul.f32 %v774_v37, %v301_v33  ;;  %v1079_v42 = vmul.f32 %v779_v38, %v302_v35  ;;  %2505 = vmatpush1.bf16.msra.mxu1 %v1141_v36  ;;  %v311_v35 = vld [vmem:[%s6908_s0 + $0x240] sm:$0xff]  ;;  %v312_v36 = vld [vmem:[%s6908_s0 + $0x248] sm:$0xff]  ;;  %v4736_v38 = vld [vmem:[%s5270_s12 + $0xb4] ss:$28 sps:$4 sm:$0xff]  }
 0x144   : > { %2506 = vmatprep.subr.bf16.mxu1 %v5149_v0 }
 0x145   : > { %v5882_v46 = vpack.c.bf16 %v1079_v42, %v1078_v40 }
 0x146   : > { %v614_v47 = vpop.permute.xlu0 %613  ;;  %v619_v48 = vpop.permute.xlu1 %618 }
 0x147   : > { %v1046_v50 = vmul.f32 %v614_v47, %v269_v43  ;;  %v1047_v51 = vmul.f32 %v619_v48, %v270_v44  ;;  %2764 = vmatpush1.bf16.msra.mxu0 %v5882_v46  ;;  %v313_v47 = vld [vmem:[%s6908_s0 + $0x250] sm:$0xff]  ;;  %v314_v48 = vld [vmem:[%s6908_s0 + $0x258] sm:$0xff] }
 0x148   : > { %2990 = vmatprep.subr.bf16.mxu0 %v5149_v0 }
 0x149   : > { %v1142_v57 = vpack.c.bf16 %v1047_v51, %v1046_v50  ;;  %v4739_v50 = vld [vmem:[%s5270_s12 + $0xac] ss:$28 sps:$4 sm:$0xff]  }
 0x14a   : > { %v784_v58 = vpop.permute.xlu0 %783  ;;  %v789_v59 = vpop.permute.xlu1 %788  ;;  %2766 = vmatmul.mubr.bf16.vlgmr.msra.gmra.mrb[0].mxu0 %v4718_v49 }
 0x14b   : > { %v1080_v62 = vmul.f32 %v784_v58, %v303_v54  ;;  %v1081_v63 = vmul.f32 %v789_v59, %v304_v55  ;;  %2507 = vmatpush1.bf16.msra.mxu1 %v1142_v57  ;;  %2773 = vmatprep.mubr.bf16.mxu0 %v4724_v53  ;;  %v315_v57 = vld [vmem:[%s6908_s0 + $0x260] sm:$0xff]  ;;  %v316_v58 = vld [vmem:[%s6908_s0 + $0x268] sm:$0xff] }
 0x14c   : > { %4393 = vmatprep.subr.bf16.mxu1 %v5149_v0 }
 0x14d   : > { %v1159_v4 = vpack.c.bf16 %v1081_v63, %v1080_v62 }
 0x14e   : > { %v794_v6 = vpop.permute.xlu0 %793  ;;  %v799_v8 = vpop.permute.xlu1 %798  ;;  %2509 = vmatmul.mubr.bf16.vlgmr.msra.gmra.mrb[0].mxu1 %v4721_v60  ;;  %v4742_v60 = vld [vmem:[%s5270_s12 + $0xec] ss:$28 sps:$4 sm:$0xff]  }
 0x14f   : > { %v1082_v11 = vmul.f32 %v794_v6, %v305_v2  ;;  %v1083_v12 = vmul.f32 %v799_v8, %v306_v3  ;;  %4409 = vmatpush1.bf16.msra.mxu1 %v5510_v25  ;;  %2991 = vmatpush1.bf16.msra.mxu0 %v1159_v4  ;;  %v4729_v25 = vld [vmem:[%s5270_s12 + $0x38] ss:$28 sps:$4 sm:$0xff]   ;;  %v4745_v8 = vld [vmem:[%s5270_s12 + $0xe4] ss:$28 sps:$4 sm:$0xff]  }
 0x150   : > { %4394 = vmatprep.subr.bf16.mxu1 %v5149_v0  ;;  %2992 = vmatprep.subr.bf16.mxu0 %v5149_v0  ;;  %v317_v4 = vld [vmem:[%s6908_s0 + $0x270] sm:$0xff] }
 0x151   : > { %v1160_v15 = vpack.c.bf16 %v1083_v12, %v1082_v11  ;;  %2516 = vmatprep.mubr.bf16.mxu1 %v4727_v5  ;;  %v318_v5 = vld [vmem:[%s6908_s0 + $0x278] sm:$0xff] }
 0x152   : > { %v804_v17 = vpop.permute.xlu0 %803  ;;  %v809_v19 = vpop.permute.xlu1 %808  ;;  %2774 = vmatmul.mubr.bf16.gmra.mrb[4].mxu0 %v4726_v9 }
 0x153   : > { %v1084_v21 = vmul.f32 %v804_v17, %v307_v13  ;;  %v1085_v22 = vmul.f32 %v809_v19, %v308_v14  ;;  %4410 = vmatpush1.bf16.msra.mxu1 %v5525_v34  ;;  %2993 = vmatpush1.bf16.msra.mxu0 %v1160_v15  ;;  %v4732_v34 = vld [vmem:[%s5270_s12 + $0x78] ss:$28 sps:$4 sm:$0xff]   ;;  %v319_v14 = vld [vmem:[%s6908_s0 + $0x280] sm:$0xff]  ;;  %v320_v15 = vld [vmem:[%s6908_s0 + $0x288] sm:$0xff] }
 0x154   : > { %4395 = vmatprep.subr.bf16.mxu1 %v5149_v0  ;;  %2994 = vmatprep.subr.bf16.mxu0 %v5149_v0  ;;  %v4748_v17 = vld [vmem:[%s5270_s12 + $0x124] ss:$28 sps:$4 sm:$0xff]  }
 0x155   : > { %v1161_v27 = vpack.c.bf16 %v1085_v22, %v1084_v21  ;;  %2781 = vmatprep.mubr.bf16.mxu0 %v4730_v16 }
 0x156   : > { %v814_v30 = vpop.permute.xlu0 %813  ;;  %v819_v31 = vpop.permute.xlu1 %818  ;;  %2517 = vmatmul.mubr.bf16.gmra.mrb[4].mxu1 %v4729_v25 }
 0x157   : > { %v1086_v32 = vmul.f32 %v814_v30, %v309_v23  ;;  %v1087_v33 = vmul.f32 %v819_v31, %v310_v24  ;;  %4411 = vmatpush1.bf16.msra.mxu1 %v5555_v52  ;;  %2995 = vmatpush1.bf16.msra.mxu0 %v1161_v27  ;;  %v4735_v52 = vld [vmem:[%s5270_s12 + $0x70] ss:$28 sps:$4 sm:$0xff]   ;;  %v322_v24 = vld [vmem:[%s6908_s0 + $0x298] sm:$0xff] }
 0x158   : > { %4396 = vmatprep.subr.bf16.mxu1 %v5149_v0  ;;  %2996 = vmatprep.subr.bf16.mxu0 %v5149_v0  ;;  %v321_v23 = vld [vmem:[%s6908_s0 + $0x290] sm:$0xff] }
 0x159   : > { %v1162_v37 = vpack.c.bf16 %v1087_v33, %v1086_v32  ;;  %2524 = vmatprep.mubr.bf16.mxu1 %v4733_v29  ;;  %v4751_v29 = vld [vmem:[%s5270_s12 + $0x11c] ss:$28 sps:$4 sm:$0xff]   ;;  %v323_v33 = vld [vmem:[%s6908_s0 + $0x2a0] sm:$0xff] }
 0x15a   : > { %v824_v40 = vpop.permute.xlu0 %823  ;;  %v829_v42 = vpop.permute.xlu1 %828  ;;  %2782 = vmatmul.mubr.bf16.gmra.mrb[8].mxu0 %v4732_v34 }
 0x15b   : > { %v1088_v43 = vmul.f32 %v824_v40, %v311_v35  ;;  %v1089_v44 = vmul.f32 %v829_v42, %v312_v36  ;;  %4412 = vmatpush1.bf16.msra.mxu1 %v5584_v7  ;;  %2997 = vmatpush1.bf16.msra.mxu0 %v1162_v37  ;;  %v4738_v7 = vld [vmem:[%s5270_s12 + $0xb0] ss:$28 sps:$4 sm:$0xff]   ;;  %v4754_v37 = vld [vmem:[%s5270_s12 + $0x15c] ss:$28 sps:$4 sm:$0xff]  }
 0x15c   : > { %4397 = vmatprep.subr.bf16.mxu1 %v5149_v0  ;;  %2998 = vmatprep.subr.bf16.mxu0 %v5149_v0  ;;  %v324_v35 = vld [vmem:[%s6908_s0 + $0x2a8] sm:$0xff] }
 0x15d   : > { %v1163_v49 = vpack.c.bf16 %v1089_v44, %v1088_v43  ;;  %2789 = vmatprep.mubr.bf16.mxu0 %v4736_v38  ;;  %v325_v43 = vld [vmem:[%s6908_s0 + $0x2b0] sm:$0xff]  ;;  %v326_v44 = vld [vmem:[%s6908_s0 + $0x2b8] sm:$0xff] }
 0x15e   : > { %v834_v51 = vpop.permute.xlu0 %833  ;;  %v839_v53 = vpop.permute.xlu1 %838  ;;  %2525 = vmatmul.mubr.bf16.gmra.mrb[8].mxu1 %v4735_v52 }
 0x15f   : > { %v1090_v54 = vmul.f32 %v834_v51, %v313_v47  ;;  %v1091_v55 = vmul.f32 %v839_v53, %v314_v48  ;;  %4413 = vmatpush1.bf16.msra.mxu1 %v5613_v26  ;;  %2999 = vmatpush1.bf16.msra.mxu0 %v1163_v49  ;;  %v4741_v26 = vld [vmem:[%s5270_s12 + $0xa8] ss:$28 sps:$4 sm:$0xff]   ;;  %v4757_v48 = vld [vmem:[%s5270_s12 + $0x154] ss:$28 sps:$4 sm:$0xff]  }
 0x160   : > { %4398 = vmatprep.subr.bf16.mxu1 %v5149_v0  ;;  %3000 = vmatprep.subr.bf16.mxu0 %v5149_v0 }
 0x161   : > { %v1164_v59 = vpack.c.bf16 %v1091_v55, %v1090_v54  ;;  %2532 = vmatprep.mubr.bf16.mxu1 %v4739_v50  ;;  %v328_v54 = vld [vmem:[%s6908_s0 + $0x2c8] sm:$0xff] }
 0x162   : > { %v844_v62 = vpop.permute.xlu0 %843  ;;  %v849_v63 = vpop.permute.xlu1 %848  ;;  %2790 = vmatmul.mubr.bf16.gmra.mrb[12].mxu0 %v4738_v7  ;;  %v327_v7 = vld [vmem:[%s6908_s0 + $0x2c0] sm:$0xff] }
 0x163   : > { %v1092_v2 = vmul.f32 %v844_v62, %v315_v57  ;;  %v1093_v3 = vmul.f32 %v849_v63, %v316_v58  ;;  %4414 = vmatpush1.bf16.msra.mxu1 %v5642_v45  ;;  %3001 = vmatpush1.bf16.msra.mxu0 %v1164_v59  ;;  %v4744_v45 = vld [vmem:[%s5270_s12 + $0xe8] ss:$28 sps:$4 sm:$0xff]   ;;  %v4760_v57 = vld [vmem:[%s5270_s12 + $0x194] ss:$28 sps:$4 sm:$0xff]  }
 0x164   : > { %4399 = vmatprep.subr.bf16.mxu1 %v5149_v0  ;;  %3002 = vmatprep.subr.bf16.mxu0 %v5149_v0  ;;  %v329_v63 = vld [vmem:[%s6908_s0 + $0x2d0] sm:$0xff] }
 0x165   : > { %v1165_v6 = vpack.c.bf16 %v1093_v3, %v1092_v2  ;;  %2797 = vmatprep.mubr.bf16.mxu0 %v4742_v60  ;;  %v4763_v3 = vld [vmem:[%s5270_s12 + $0x18c] ss:$28 sps:$4 sm:$0xff]  }
 0x166   : > { %v854_v9 = vpop.permute.xlu0 %853  ;;  %v859_v11 = vpop.permute.xlu1 %858  ;;  %2533 = vmatmul.mubr.bf16.gmra.mrb[12].mxu1 %v4741_v26  ;;  %v330_v26 = vld [vmem:[%s6908_s0 + $0x2d8] sm:$0xff] }
 0x167   : > { %v1094_v12 = vmul.f32 %v854_v9, %v317_v4  ;;  %v1095_v13 = vmul.f32 %v859_v11, %v318_v5  ;;  %4415 = vmatpush1.bf16.msra.mxu1 %v5671_v1  ;;  %3003 = vmatpush1.bf16.msra.mxu0 %v1165_v6  ;;  %v4747_v1 = vld [vmem:[%s5270_s12 + $0xe0] ss:$28 sps:$4 sm:$0xff]   ;;  %v332_v11 = vld [vmem:[%s6908_s0 + $0x2e8] sm:$0xff] }
 0x168   : > { %4400 = vmatprep.subr.bf16.mxu1 %v5149_v0  ;;  %3004 = vmatprep.subr.bf16.mxu0 %v5149_v0  ;;  %v331_v9 = vld [vmem:[%s6908_s0 + $0x2e0] sm:$0xff] }
 0x169   : > { %v1166_v16 = vpack.c.bf16 %v1095_v13, %v1094_v12  ;;  %2540 = vmatprep.mubr.bf16.mxu1 %v4745_v8  ;;  %v4766_v12 = vld [vmem:[%s5270_s12 + $0x1cc] ss:$28 sps:$4 sm:$0xff]  }
 0x16a   : > { %v864_v19 = vpop.permute.xlu0 %863  ;;  %v869_v25 = vpop.permute.xlu1 %868  ;;  %2798 = vmatmul.mubr.bf16.gmra.mrb[16].mxu0 %v4744_v45 }
 0x16b   : > { %v1096_v21 = vmul.f32 %v864_v19, %v319_v14  ;;  %v1097_v22 = vmul.f32 %v869_v25, %v320_v15  ;;  %4416 = vmatpush1.bf16.msra.mxu1 %v5700_v20  ;;  %3005 = vmatpush1.bf16.msra.mxu0 %v1166_v16  ;;  %v4750_v20 = vld [vmem:[%s5270_s12 + $0x120] ss:$28 sps:$4 sm:$0xff]  }
 0x16c   : > { %4401 = vmatprep.subr.bf16.mxu1 %v5149_v0  ;;  %3006 = vmatprep.subr.bf16.mxu0 %v5149_v0  ;;  %v334_v19 = vld [vmem:[%s6908_s0 + $0x2f8] sm:$0xff] }
 0x16d   : > { %v1167_v27 = vpack.c.bf16 %v1097_v22, %v1096_v21  ;;  %2805 = vmatprep.mubr.bf16.mxu0 %v4748_v17  ;;  %v333_v17 = vld [vmem:[%s6908_s0 + $0x2f0] sm:$0xff] }
 0x16e   : > { %v874_v30 = vpop.permute.xlu0 %873  ;;  %v879_v31 = vpop.permute.xlu1 %878  ;;  %2541 = vmatmul.mubr.bf16.gmra.mrb[16].mxu1 %v4747_v1  ;;  %v4769_v1 = vld [vmem:[%s5270_s12 + $0x1c4] ss:$28 sps:$4 sm:$0xff]  }
 0x16f   : > { %v1098_v34 = vmul.f32 %v874_v30, %v321_v23  ;;  %v1099_v32 = vmul.f32 %v879_v31, %v322_v24  ;;  %4417 = vmatpush1.bf16.msra.mxu1 %v5729_v41  ;;  %3007 = vmatpush1.bf16.msra.mxu0 %v1167_v27  ;;  %v4753_v41 = vld [vmem:[%s5270_s12 + $0x118] ss:$28 sps:$4 sm:$0xff]   ;;  %v335_v27 = vld [vmem:[%s6908_s0 + $0x300] sm:$0xff] }
 0x170   : > { %4402 = vmatprep.subr.bf16.mxu1 %v5149_v0  ;;  %3008 = vmatprep.subr.bf16.mxu0 %v5149_v0  ;;  %v4772_v30 = vld [vmem:[%s5270_s12 + $0x204] ss:$28 sps:$4 sm:$0xff]  }
 0x171   : > { %v1168_v36 = vpack.c.bf16 %v1099_v32, %v1098_v34  ;;  %2548 = vmatprep.mubr.bf16.mxu1 %v4751_v29  ;;  %v336_v29 = vld [vmem:[%s6908_s0 + $0x308] sm:$0xff]  ;;  %v4771_v34 = vld [vmem:[%s5270_s12 + $0x1c0] ss:$28 sps:$4 sm:$0xff]  }
 0x172   : > { %v884_v38 = vpop.permute.xlu0 %883  ;;  %v889_v40 = vpop.permute.xlu1 %888  ;;  %2806 = vmatmul.mubr.bf16.gmra.mrb[20].mxu0 %v4750_v20 }
 0x173   : > { %v1100_v42 = vmul.f32 %v884_v38, %v323_v33  ;;  %v1101_v52 = vmul.f32 %v889_v40, %v324_v35  ;;  %4418 = vmatpush1.bf16.msra.mxu1 %v5758_v61  ;;  %3009 = vmatpush1.bf16.msra.mxu0 %v1168_v36  ;;  %v4756_v61 = vld [vmem:[%s5270_s12 + $0x158] ss:$28 sps:$4 sm:$0xff]   ;;  %v4774_v36 = vld [vmem:[%s5270_s12 + $0x200] ss:$28 sps:$4 sm:$0xff]  }
 0x174   : > { %4403 = vmatprep.subr.bf16.mxu1 %v5149_v0  ;;  %3010 = vmatprep.subr.bf16.mxu0 %v5149_v0  ;;  %v4775_v35 = vld [vmem:[%s5270_s12 + $0x1fc] ss:$28 sps:$4 sm:$0xff]  }
 0x175   : > { %v1169_v47 = vpack.c.bf16 %v1101_v52, %v1100_v42  ;;  %2813 = vmatprep.mubr.bf16.mxu0 %v4754_v37  ;;  %v4778_v37 = vld [vmem:[%s5270_s12 + $0x23c] ss:$28 sps:$4 sm:$0xff]   ;;  %v4783_v42 = vld [vmem:[%s5270_s12 + $0x230] ss:$28 sps:$4 sm:$0xff]  }
 0x176   : > { %v894_v49 = vpop.permute.xlu0 %893  ;;  %v899_v50 = vpop.permute.xlu1 %898  ;;  %2549 = vmatmul.mubr.bf16.gmra.mrb[20].mxu1 %v4753_v41  ;;  %v4777_v38 = vld [vmem:[%s5270_s12 + $0x1f8] ss:$28 sps:$4 sm:$0xff]   ;;  %v4787_v52 = vld [vmem:[%s5270_s12 + $0x26c] ss:$28 sps:$4 sm:$0xff]  }
 0x177   : > { %v1102_v51 = vmul.f32 %v894_v49, %v325_v43  ;;  %v1103_v53 = vmul.f32 %v899_v50, %v326_v44  ;;  %4419 = vmatpush1.bf16.msra.mxu1 %v5787_v18  ;;  %3011 = vmatpush1.bf16.msra.mxu0 %v1169_v47  ;;  %v4759_v18 = vld [vmem:[%s5270_s12 + $0x150] ss:$28 sps:$4 sm:$0xff]   ;;  %v4780_v40 = vld [vmem:[%s5270_s12 + $0x238] ss:$28 sps:$4 sm:$0xff]   ;;  %v4789_v47 = vld [vmem:[%s5270_s12 + $0x268] ss:$28 sps:$4 sm:$0xff]  }
 0x178   : > { %4404 = vmatprep.subr.bf16.mxu1 %v5149_v0  ;;  %3012 = vmatprep.subr.bf16.mxu0 %v5149_v0  ;;  %v4784_v41 = vld [vmem:[%s5270_s12 + $0x274] ss:$28 sps:$4 sm:$0xff]   ;;  %v4790_v44 = vld [vmem:[%s5270_s12 + $0x2ac] ss:$28 sps:$4 sm:$0xff]   ;;  %v4796_v50 = vld [vmem:[%s5270_s12 + $0x2e4] ss:$28 sps:$4 sm:$0xff]  }
 0x179   : > { %v1170_v55 = vpack.c.bf16 %v1103_v53, %v1102_v51  ;;  %2556 = vmatprep.mubr.bf16.mxu1 %v4757_v48  ;;  %v4786_v43 = vld [vmem:[%s5270_s12 + $0x270] ss:$28 sps:$4 sm:$0xff]   ;;  %v4793_v48 = vld [vmem:[%s5270_s12 + $0x2a4] ss:$28 sps:$4 sm:$0xff]   ;;  %v4799_v51 = vld [vmem:[%s5270_s12 + $0x2dc] ss:$28 sps:$4 sm:$0xff]  }
 0x17a   : > { %v904_v58 = vpop.permute.xlu0 %903  ;;  %v909_v59 = vpop.permute.xlu1 %908  ;;  %2814 = vmatmul.mubr.bf16.gmra.mrb[24].mxu0 %v4756_v61  ;;  %v4792_v49 = vld [vmem:[%s5270_s12 + $0x2a8] ss:$28 sps:$4 sm:$0xff]   ;;  %v4795_v61 = vld [vmem:[%s5270_s12 + $0x2a0] ss:$28 sps:$4 sm:$0xff]  }
 0x17b   : > { %v1104_v60 = vmul.f32 %v904_v58, %v327_v7  ;;  %v1105_v62 = vmul.f32 %v909_v59, %v328_v54  ;;  %4420 = vmatpush1.bf16.msra.mxu1 %v5813_v39  ;;  %3013 = vmatpush1.bf16.msra.mxu0 %v1170_v55  ;;  %v4762_v39 = vld [vmem:[%s5270_s12 + $0x190] ss:$28 sps:$4 sm:$0xff]   ;;  %v4798_v53 = vld [vmem:[%s5270_s12 + $0x2e0] ss:$28 sps:$4 sm:$0xff]   ;;  %v4801_v54 = vld [vmem:[%s5270_s12 + $0x2d8] ss:$28 sps:$4 sm:$0xff]  }
 0x17c   : > { %4405 = vmatprep.subr.bf16.mxu1 %v5149_v0  ;;  %3014 = vmatprep.subr.bf16.mxu0 %v5149_v0  ;;  %v4802_v7 = vld [vmem:[%s5270_s12 + $0x31c] ss:$28 sps:$4 sm:$0xff]   ;;  %v4805_v55 = vld [vmem:[%s5270_s12 + $0x314] ss:$28 sps:$4 sm:$0xff]  }
 0x17d   : > { %v1171_v2 = vpack.c.bf16 %v1105_v62, %v1104_v60  ;;  %2821 = vmatprep.mubr.bf16.mxu0 %v4760_v57  ;;  %v4804_v57 = vld [vmem:[%s5270_s12 + $0x318] ss:$28 sps:$4 sm:$0xff]   ;;  %v4807_v59 = vld [vmem:[%s5270_s12 + $0x310] ss:$28 sps:$4 sm:$0xff]  }
 0x17e   : > { %v914_v4 = vpop.permute.xlu0 %913  ;;  %v919_v5 = vpop.permute.xlu1 %918  ;;  %2557 = vmatmul.mubr.bf16.gmra.mrb[24].mxu1 %v4759_v18  ;;  %v4808_v58 = vld [vmem:[%s5270_s12 + $0x354] ss:$28 sps:$4 sm:$0xff]   ;;  %v4811_v18 = vld [vmem:[%s5270_s12 + $0x34c] ss:$28 sps:$4 sm:$0xff]  }
 0x17f   : > { %v1106_v6 = vmul.f32 %v914_v4, %v329_v63  ;;  %v1107_v8 = vmul.f32 %v919_v5, %v330_v26  ;;  %4421 = vmatpush1.bf16.msra.mxu1 %v5831_v56  ;;  %3015 = vmatpush1.bf16.msra.mxu0 %v1171_v2  ;;  %v4765_v56 = vld [vmem:[%s5270_s12 + $0x188] ss:$28 sps:$4 sm:$0xff]   ;;  %v4810_v60 = vld [vmem:[%s5270_s12 + $0x350] ss:$28 sps:$4 sm:$0xff]   ;;  %v4819_v4 = vld [vmem:[%s5270_s12 + $0x380] ss:$28 sps:$4 sm:$0xff]  }
 0x180   : > { %4406 = vmatprep.subr.bf16.mxu1 %v5149_v0  ;;  %3016 = vmatprep.subr.bf16.mxu0 %v5149_v0  ;;  %v4814_v62 = vld [vmem:[%s5270_s12 + $0x38c] ss:$28 sps:$4 sm:$0xff]   ;;  %v4817_v26 = vld [vmem:[%s5270_s12 + $0x384] ss:$28 sps:$4 sm:$0xff]   ;;  %v4823_v5 = vld [vmem:[%s5270_s12 + $0x3bc] ss:$28 sps:$4 sm:$0xff]  }
 0x181   : > { %v1172_v45 = vpack.c.bf16 %v1107_v8, %v1106_v6  ;;  %2564 = vmatprep.mubr.bf16.mxu1 %v4763_v3  ;;  %v4813_v63 = vld [vmem:[%s5270_s12 + $0x348] ss:$28 sps:$4 sm:$0xff]   ;;  %v4826_v6 = vld [vmem:[%s5270_s12 + $0x3fc] ss:$28 sps:$4 sm:$0xff]  }
 0x182   : > { %v924_v13 = vpop.permute.xlu0 %923  ;;  %v929_v14 = vpop.permute.xlu1 %928  ;;  %2822 = vmatmul.mubr.bf16.gmra.mrb[28].mxu0 %v4762_v39  ;;  %v4816_v2 = vld [vmem:[%s5270_s12 + $0x388] ss:$28 sps:$4 sm:$0xff]   ;;  %v4822_v39 = vld [vmem:[%s5270_s12 + $0x3c0] ss:$28 sps:$4 sm:$0xff]   ;;  %v4825_v8 = vld [vmem:[%s5270_s12 + $0x3b8] ss:$28 sps:$4 sm:$0xff]  }
 0x183   : > { %v1108_v15 = vmul.f32 %v924_v13, %v331_v9  ;;  %v1109_v16 = vmul.f32 %v929_v14, %v332_v11  ;;  %4422 = vmatpush1.bf16.msra.mxu1 %v5848_v10  ;;  %3017 = vmatpush1.bf16.msra.mxu0 %v1172_v45  ;;  %v4768_v10 = vld [vmem:[%s5270_s12 + $0x1c8] ss:$28 sps:$4 sm:$0xff]   ;;  %v4829_v9 = vld [vmem:[%s5270_s12 + $0x3f4] ss:$28 sps:$4 sm:$0xff]  }
 0x184   : > { %4407 = vmatprep.subr.bf16.mxu1 %v5149_v0  ;;  %3018 = vmatprep.subr.bf16.mxu0 %v5149_v0  ;;  %v4820_v3 = vld [vmem:[%s5270_s12 + $0x3c4] ss:$28 sps:$4 sm:$0xff]   ;;  %v4828_v11 = vld [vmem:[%s5270_s12 + $0x3f8] ss:$28 sps:$4 sm:$0xff]   ;;  %v4835_v13 = vld [vmem:[%s5270_s12 + $0x42c] ss:$28 sps:$4 sm:$0xff]  }
 0x185   : > { %v1173_v25 = vpack.c.bf16 %v1109_v16, %v1108_v15  ;;  %2829 = vmatprep.mubr.bf16.mxu0 %v4766_v12  ;;  %v4832_v45 = vld [vmem:[%s5270_s12 + $0x434] ss:$28 sps:$4 sm:$0xff]   ;;  %v4837_v15 = vld [vmem:[%s5270_s12 + $0x428] ss:$28 sps:$4 sm:$0xff]  }
 0x186   : > { %v934_v21 = vpop.permute.xlu0 %933  ;;  %v939_v22 = vpop.permute.xlu1 %938  ;;  %2565 = vmatmul.mubr.bf16.gmra.mrb[28].mxu1 %v4765_v56  ;;  %v4831_v12 = vld [vmem:[%s5270_s12 + $0x3f0] ss:$28 sps:$4 sm:$0xff]   ;;  %v4841_v16 = vld [vmem:[%s5270_s12 + $0x464] ss:$28 sps:$4 sm:$0xff]  }
 0x187   : > { %v1110_v23 = vmul.f32 %v934_v21, %v333_v17  ;;  %v1111_v24 = vmul.f32 %v939_v22, %v334_v19  ;;  %4423 = vmatpush1.bf16.msra.mxu1 %v5865_v28  ;;  %3019 = vmatpush1.bf16.msra.mxu0 %v1173_v25  ;;  %v4834_v14 = vld [vmem:[%s5270_s12 + $0x430] ss:$28 sps:$4 sm:$0xff]   ;;  %v4840_v17 = vld [vmem:[%s5270_s12 + $0x468] ss:$28 sps:$4 sm:$0xff]   ;;  %v4843_v25 = vld [vmem:[%s5270_s12 + $0x460] ss:$28 sps:$4 sm:$0xff]  }
 0x188   : > { %4408 = vmatprep.subr.bf16.mxu1 %v5149_v0  ;;  %3020 = vmatprep.subr.bf16.mxu0 %v5149_v0  ;;  %v4838_v56 = vld [vmem:[%s5270_s12 + $0x46c] ss:$28 sps:$4 sm:$0xff]   ;;  %v4846_v19 = vld [vmem:[%s5270_s12 + $0x14] ss:$28 sps:$4 sm:$0xff]  }
 0x189   : > { %v1174_v31 = vpack.c.bf16 %v1111_v24, %v1110_v23  ;;  %2572 = vmatprep.mubr.bf16.mxu1 %v4769_v1  ;;  %v4847_v1 = vld [vmem:[%s5270_s12 + $0x49c] ss:$28 sps:$4 sm:$0xff]   ;;  %v4844_v21 = vld [vmem:[%s5270_s12 + $0x10] ss:$28 sps:$4 sm:$0xff]   ;;  %v4852_v24 = vld [vmem:[%s5270_s12 + $0x48] ss:$28 sps:$4 sm:$0xff]  }
 0x18a   : > { %v944_v28 = vpop.permute.xlu0 %943  ;;  %v949_v20 = vpop.permute.xlu1 %948  ;;  %2830 = vmatmul.mubr.bf16.gmra.mrb[32].mxu0 %v4768_v10  ;;  %v4850_v22 = vld [vmem:[%s5270_s12 + $0x4c] ss:$28 sps:$4 sm:$0xff]   ;;  %v4849_v10 = vld [vmem:[%s5270_s12 + $0x498] ss:$28 sps:$4 sm:$0xff]  }
 0x18b   : > { %v1112_v32 = vmul.f32 %v944_v28, %v335_v27  ;;  %v1113_v33 = vmul.f32 %v949_v20, %v336_v29  ;;  %4424 = vmatpush1.bf16.msra.mxu1 %v5882_v46  ;;  %3021 = vmatpush1.bf16.msra.mxu0 %v1174_v31  ;;  %v4781_v46 = vld [vmem:[%s5270_s12 + $0x234] ss:$28 sps:$4 sm:$0xff]   ;;  %v4856_v27 = vld [vmem:[%s5270_s12 + $0x84] ss:$28 sps:$4 sm:$0xff]   ;;  %v4862_v28 = vld [vmem:[%s5270_s12 + $0xbc] ss:$28 sps:$4 sm:$0xff]  }
 0x18c   : > { %2837 = vmatprep.mubr.bf16.mxu0 %v4772_v30  ;;  %v4853_v23 = vld [vmem:[%s5270_s12 + $0x4d4] ss:$28 sps:$4 sm:$0xff]   ;;  %v4859_v30 = vld [vmem:[%s5270_s12 + $0x50c] ss:$28 sps:$4 sm:$0xff]   ;;  %v4858_v31 = vld [vmem:[%s5270_s12 + $0x80] ss:$28 sps:$4 sm:$0xff]  }
 0x18d   : > { %v6071_v0 = vpack.c.bf16 %v1113_v33, %v1112_v32  ;;  %v4855_v29 = vld [vmem:[%s5270_s12 + $0x4d0] ss:$28 sps:$4 sm:$0xff]   ;;  %v4861_v20 = vld [vmem:[%s5270_s12 + $0x508] ss:$28 sps:$4 sm:$0xff]   ;;  %v4864_v32 = vld [vmem:[%s5270_s12 + $0xb8] ss:$28 sps:$4 sm:$0xff]  }
 0x18e   : > { %2573 = vmatmul.mubr.bf16.gmra.mrb[32].mxu1 %v4771_v34  ;;  %v4865_v34 = vld [vmem:[%s5270_s12 + $0x544] ss:$28 sps:$4 sm:$0xff]   ;;  %v4868_v33 = vld [vmem:[%s5270_s12 + $0xf4] ss:$28 sps:$4 sm:$0xff]  }
 0x18f   : > { %4321 = vmatprep.subr.bf16.mxu1 %v6071_v0  ;;  %2580 = vmatprep.mubr.bf16.mxu1 %v4775_v35  ;;  %v4867_v35 = vld [vmem:[%s5270_s12 + $0x540] ss:$28 sps:$4 sm:$0xff]  }
 0x192   : > { %2838 = vmatmul.mubr.bf16.gmra.mrb[36].mxu0 %v4774_v36  ;;  %v4871_v36 = vld [vmem:[%s5270_s12 + $0x57c] ss:$28 sps:$4 sm:$0xff]  }
 0x193   : > { %2845 = vmatprep.mubr.bf16.mxu0 %v4778_v37  ;;  %v4870_v37 = vld [vmem:[%s5270_s12 + $0xf0] ss:$28 sps:$4 sm:$0xff]  }
 0x196   : > { %2581 = vmatmul.mubr.bf16.gmra.mrb[36].mxu1 %v4777_v38  ;;  %v4874_v38 = vld [vmem:[%s5270_s12 + $0x12c] ss:$28 sps:$4 sm:$0xff]  }
 0x197   : > { %2588 = vmatprep.mubr.bf16.mxu1 %v4781_v46  ;;  %v4873_v46 = vld [vmem:[%s5270_s12 + $0x578] ss:$28 sps:$4 sm:$0xff]  }
 0x19a   : > { %2846 = vmatmul.mubr.bf16.gmra.mrb[40].mxu0 %v4780_v40  ;;  %v4877_v40 = vld [vmem:[%s5270_s12 + $0x5b4] ss:$28 sps:$4 sm:$0xff]  }
 0x19b   : > { %2853 = vmatprep.mubr.bf16.mxu0 %v4784_v41  ;;  %v4876_v41 = vld [vmem:[%s5270_s12 + $0x128] ss:$28 sps:$4 sm:$0xff]  }
 0x19e   : > { %2589 = vmatmul.mubr.bf16.gmra.mrb[40].mxu1 %v4783_v42  ;;  %v4880_v42 = vld [vmem:[%s5270_s12 + $0x164] ss:$28 sps:$4 sm:$0xff]  }
 0x19f   : > { %2596 = vmatprep.mubr.bf16.mxu1 %v4787_v52  ;;  %v4879_v52 = vld [vmem:[%s5270_s12 + $0x5b0] ss:$28 sps:$4 sm:$0xff]  }
 0x1a2   : > { %2854 = vmatmul.mubr.bf16.gmra.mrb[44].mxu0 %v4786_v43  ;;  %v954_v43 = vpop.permute.xlu0 %953 }
 0x1a3   : > { %2861 = vmatprep.mubr.bf16.mxu0 %v4790_v44  ;;  %v4883_v44 = vld [vmem:[%s5270_s12 + $0x5ec] ss:$28 sps:$4 sm:$0xff]  }
 0x1a6   : > { %2597 = vmatmul.mubr.bf16.gmra.mrb[44].mxu1 %v4789_v47  ;;  %v959_v47 = vpop.permute.xlu1 %958 }
 0x1a7   : > { %2604 = vmatprep.mubr.bf16.mxu1 %v4793_v48  ;;  %v4882_v48 = vld [vmem:[%s5270_s12 + $0x160] ss:$28 sps:$4 sm:$0xff]  }
 0x1aa   : > { %2862 = vmatmul.mubr.bf16.gmra.mrb[48].mxu0 %v4792_v49  ;;  %v4886_v49 = vld [vmem:[%s5270_s12 + $0x19c] ss:$28 sps:$4 sm:$0xff]  }
 0x1ab   : > { %2869 = vmatprep.mubr.bf16.mxu0 %v4796_v50  ;;  %v964_v50 = vpop.permute.xlu0 %963 }
 0x1ae   : > { %2605 = vmatmul.mubr.bf16.gmra.mrb[48].mxu1 %v4795_v61 }
 0x1af   : > { %2612 = vmatprep.mubr.bf16.mxu1 %v4799_v51 }
 0x1b2   : > { %2870 = vmatmul.mubr.bf16.gmra.mrb[52].mxu0 %v4798_v53  ;;  %v4885_v53 = vld [vmem:[%s5270_s12 + $0x5e8] ss:$28 sps:$4 sm:$0xff]  }
 0x1b3   : > { %2877 = vmatprep.mubr.bf16.mxu0 %v4802_v7  ;;  %v969_v7 = vpop.permute.xlu1 %968 }
 0x1b6   : > { %2613 = vmatmul.mubr.bf16.gmra.mrb[52].mxu1 %v4801_v54 }
 0x1b7   : > { %2620 = vmatprep.mubr.bf16.mxu1 %v4805_v55  ;;  %v4891_v55 = vld [vmem:[%s5270_s12 + $0x4a4] ss:$28 sps:$4 sm:$0xff]  }
 0x1ba   : > { %2878 = vmatmul.mubr.bf16.gmra.mrb[56].mxu0 %v4804_v57 }
 0x1bb   : > { %2885 = vmatprep.mubr.bf16.mxu0 %v4808_v58  ;;  %v4888_v58 = vld [vmem:[%s5270_s12 + $0x198] ss:$28 sps:$4 sm:$0xff]  }
 0x1be   : > { %2621 = vmatmul.mubr.bf16.gmra.mrb[56].mxu1 %v4807_v59  ;;  %v337_v59 = vld [vmem:[%s6908_s0 + $0x310] sm:$0xff] }
 0x1bf   : > { %2628 = vmatprep.mubr.bf16.mxu1 %v4811_v18  ;;  %v338_v18 = vld [vmem:[%s6908_s0 + $0x318] sm:$0xff] }
 0x1c2   : > { %2886 = vmatmul.mubr.bf16.gmra.mrb[60].mxu0 %v4810_v60  ;;  %v974_v60 = vpop.permute.xlu0 %973 }
 0x1c3   : > { %2893 = vmatprep.mubr.bf16.mxu0 %v4814_v62  ;;  %v4892_v62 = vld [vmem:[%s5270_s12 + $0x1d4] ss:$28 sps:$4 sm:$0xff]  }
 0x1c6   : > { %2629 = vmatmul.mubr.bf16.gmra.mrb[60].mxu1 %v4813_v63  ;;  %v979_v63 = vpop.permute.xlu1 %978 }
 0x1c7   : > { %2636 = vmatprep.mubr.bf16.mxu1 %v4817_v26 }
 0x1ca   : > { %2894 = vmatmul.mubr.bf16.gmra.mrb[64].mxu0 %v4816_v2  ;;  %v1114_v2 = vmul.f32 %v954_v43, %v337_v59  ;;  %v4903_v43 = vld [vmem:[%s5270_s12 + $0x510] ss:$28 sps:$4 sm:$0xff]  }
 0x1cb   : > { %2901 = vmatprep.mubr.bf16.mxu0 %v4820_v3  ;;  %v1115_v3 = vmul.f32 %v959_v47, %v338_v18  ;;  %v349_v59 = vld [vmem:[%s6908_s0 + $0x370] sm:$0xff]  ;;  %v4910_v18 = vld [vmem:[%s5270_s12 + $0x27c] ss:$28 sps:$4 sm:$0xff]  }
 0x1ce   : > { %2637 = vmatmul.mubr.bf16.gmra.mrb[64].mxu1 %v4819_v4 }
 0x1cf   : > { %2644 = vmatprep.mubr.bf16.mxu1 %v4823_v5  ;;  %v4889_v5 = vld [vmem:[%s5270_s12 + $0x4a0] ss:$28 sps:$4 sm:$0xff]  }
 0x1d2   : > { %2902 = vmatmul.mubr.bf16.gmra.mrb[68].mxu0 %v4822_v39  ;;  %v339_v39 = vld [vmem:[%s6908_s0 + $0x320] sm:$0xff] }
 0x1d3   : > { %2909 = vmatprep.mubr.bf16.mxu0 %v4826_v6  ;;  %v340_v6 = vld [vmem:[%s6908_s0 + $0x328] sm:$0xff] }
 0x1d6   : > { %2645 = vmatmul.mubr.bf16.gmra.mrb[68].mxu1 %v4825_v8 }
 0x1d7   : > { %2652 = vmatprep.mubr.bf16.mxu1 %v4829_v9  ;;  %v4895_v9 = vld [vmem:[%s5270_s12 + $0x4dc] ss:$28 sps:$4 sm:$0xff]  }
 0x1da   : > { %2910 = vmatmul.mubr.bf16.gmra.mrb[72].mxu0 %v4828_v11 }
 0x1db   : > { %2917 = vmatprep.mubr.bf16.mxu0 %v4832_v45  ;;  %v984_v45 = vpop.permute.xlu0 %983 }
 0x1de   : > { %2653 = vmatmul.mubr.bf16.gmra.mrb[72].mxu1 %v4831_v12  ;;  %v1176_v12 = vpack.c.bf16 %v1115_v3, %v1114_v2  ;;  %v4909_v3 = vld [vmem:[%s5270_s12 + $0x548] ss:$28 sps:$4 sm:$0xff]  }
 0x1df   : > { %2660 = vmatprep.mubr.bf16.mxu1 %v4835_v13  ;;  %v1116_v13 = vmul.f32 %v964_v50, %v339_v39  ;;  %v4907_v50 = vld [vmem:[%s5270_s12 + $0x54c] ss:$28 sps:$4 sm:$0xff]  }
 0x1e2   : > { %2918 = vmatmul.mubr.bf16.gmra.mrb[76].mxu0 %v4834_v14  ;;  %v1117_v14 = vmul.f32 %v969_v7, %v340_v6 }
 0x1e3   : > { %2925 = vmatprep.mubr.bf16.mxu0 %v4838_v56  ;;  %v4894_v56 = vld [vmem:[%s5270_s12 + $0x1d0] ss:$28 sps:$4 sm:$0xff]  }
 0x1e6   : > { %2661 = vmatmul.mubr.bf16.gmra.mrb[76].mxu1 %v4837_v15  ;;  %v341_v15 = vld [vmem:[%s6908_s0 + $0x330] sm:$0xff] }
 0x1e7   : > { %2668 = vmatprep.mubr.bf16.mxu1 %v4841_v16  ;;  %v342_v16 = vld [vmem:[%s6908_s0 + $0x338] sm:$0xff] }
 0x1ea   : > { %2926 = vmatmul.mubr.bf16.gmra.mrb[80].mxu0 %v4840_v17  ;;  %v989_v17 = vpop.permute.xlu1 %988 }
 0x1eb   : > { %3022 = vmatprep.mubr.bf16.mxu0 %v4846_v19  ;;  %v4898_v19 = vld [vmem:[%s5270_s12 + $0x20c] ss:$28 sps:$4 sm:$0xff]  }
 0x1ee   : > { %2669 = vmatmul.mubr.bf16.gmra.mrb[80].mxu1 %v4843_v25 }
 0x1ef   : > { %2676 = vmatprep.mubr.bf16.mxu1 %v4847_v1  ;;  %v1177_v1 = vpack.c.bf16 %v1117_v14, %v1116_v13  ;;  %v4915_v14 = vld [vmem:[%s5270_s12 + $0x580] ss:$28 sps:$4 sm:$0xff]  }
 0x1f2   : > { %3023 = vmatmul.mubr.bf16.vlgmr.msra.gmra.mrb[0].mxu0 %v4844_v21  ;;  %v1118_v21 = vmul.f32 %v974_v60, %v341_v15  ;;  %v4919_v15 = vld [vmem:[%s5270_s12 + $0x5bc] ss:$28 sps:$4 sm:$0xff]  }
 0x1f3   : > { %3030 = vmatprep.mubr.bf16.mxu0 %v4850_v22  ;;  %v1119_v22 = vmul.f32 %v979_v63, %v342_v16 }
 0x1f6   : > { %2677 = vmatmul.mubr.bf16.gmra.mrb[84].mxu1 %v4849_v10 }
 0x1f7   : > { %2684 = vmatprep.mubr.bf16.mxu1 %v4853_v23  ;;  %v4897_v23 = vld [vmem:[%s5270_s12 + $0x4d8] ss:$28 sps:$4 sm:$0xff]  }
 0x1fa   : > { %3031 = vmatmul.mubr.bf16.gmra.mrb[4].mxu0 %v4852_v24  ;;  %v343_v24 = vld [vmem:[%s6908_s0 + $0x340] sm:$0xff] }
 0x1fb   : > { %3038 = vmatprep.mubr.bf16.mxu0 %v4856_v27  ;;  %v994_v27 = vpop.permute.xlu0 %993 }
 0x1fe   : > { %2685 = vmatmul.mubr.bf16.gmra.mrb[88].mxu1 %v4855_v29 }
 0x1ff   : > { %2692 = vmatprep.mubr.bf16.mxu1 %v4859_v30  ;;  %v4901_v30 = vld [vmem:[%s5270_s12 + $0x514] ss:$28 sps:$4 sm:$0xff]  }
 0x202   : > { %3039 = vmatmul.mubr.bf16.gmra.mrb[8].mxu0 %v4858_v31 }
 0x203   : > { %3046 = vmatprep.mubr.bf16.mxu0 %v4862_v28  ;;  %v999_v28 = vpop.permute.xlu1 %998 }
 0x206   : > { %2693 = vmatmul.mubr.bf16.gmra.mrb[92].mxu1 %v4861_v20  ;;  %v1178_v20 = vpack.c.bf16 %v1119_v22, %v1118_v21  ;;  %v4921_v22 = vld [vmem:[%s5270_s12 + $0x5b8] ss:$28 sps:$4 sm:$0xff]  }
 0x207   : > { %2700 = vmatprep.mubr.bf16.mxu1 %v4865_v34  ;;  %v1120_v34 = vmul.f32 %v984_v45, %v343_v24  ;;  %v1009_v47 = vpop.permute.xlu1 %1008 }
 0x20a   : > { %3047 = vmatmul.mubr.bf16.gmra.mrb[12].mxu0 %v4864_v32 }
 0x20b   : > { %3054 = vmatprep.mubr.bf16.mxu0 %v4868_v33  ;;  %v4900_v33 = vld [vmem:[%s5270_s12 + $0x208] ss:$28 sps:$4 sm:$0xff]  }
 0x20e   : > { %2701 = vmatmul.mubr.bf16.gmra.mrb[96].mxu1 %v4867_v35  ;;  %v345_v35 = vld [vmem:[%s6908_s0 + $0x350] sm:$0xff] }
 0x20f   : > { %2708 = vmatprep.mubr.bf16.mxu1 %v4871_v36  ;;  %v346_v36 = vld [vmem:[%s6908_s0 + $0x358] sm:$0xff] }
 0x212   : > { %3055 = vmatmul.mubr.bf16.gmra.mrb[16].mxu0 %v4870_v37  ;;  %v4904_v37 = vld [vmem:[%s5270_s12 + $0x244] ss:$28 sps:$4 sm:$0xff]  }
 0x213   : > { %3062 = vmatprep.mubr.bf16.mxu0 %v4874_v38  ;;  %v1004_v38 = vpop.permute.xlu0 %1003 }
 0x216   : > { %2709 = vmatmul.mubr.bf16.gmra.mrb[100].mxu1 %v4873_v46 }
 0x217   : > { %2716 = vmatprep.mubr.bf16.mxu1 %v4877_v40 }
 0x21a   : > { %3063 = vmatmul.mubr.bf16.gmra.mrb[20].mxu0 %v4876_v41  ;;  %v1122_v41 = vmul.f32 %v994_v27, %v345_v35  ;;  %v4928_v27 = vld [vmem:[%s5270_s12 + $0x324] ss:$28 sps:$4 sm:$0xff]   ;;  %v4933_v35 = vld [vmem:[%s5270_s12 + $0x35c] ss:$28 sps:$4 sm:$0xff]  }
 0x21b   : > { %3070 = vmatprep.mubr.bf16.mxu0 %v4880_v42  ;;  %v1123_v42 = vmul.f32 %v999_v28, %v346_v36  ;;  %v4927_v28 = vld [vmem:[%s5270_s12 + $0x5f0] ss:$28 sps:$4 sm:$0xff]  }
 0x21e   : > { %2717 = vmatmul.mubr.bf16.gmra.mrb[104].mxu1 %v4879_v52 }
 0x21f   : > { %2724 = vmatprep.mubr.bf16.mxu1 %v4883_v44  ;;  %v347_v44 = vld [vmem:[%s6908_s0 + $0x360] sm:$0xff] }
 0x220   : > { %v1124_v7 = vmul.f32 %v1004_v38, %v347_v44  ;;  %v4932_v38 = vld [vmem:[%s5270_s12 + $0x50] ss:$28 sps:$4 sm:$0xff]  }
 0x221   : > { %v6148_v61 = vpop.f32.mrb[0].mxu1 }
 0x222   : > { %v2512_v51 = vpop.f32.mrb[1].mxu1  ;;  %3071 = vmatmul.mubr.bf16.gmra.mrb[24].mxu0 %v4882_v48  ;;  %v348_v48 = vld [vmem:[%s6908_s0 + $0x368] sm:$0xff] }
 0x223   : > { %v6151_v54 = vpop.f32.mrb[2].mxu1  ;;  %3078 = vmatprep.mubr.bf16.mxu0 %v4886_v49 }
 0x224   : > { %v2515_v57 = vpop.f32.mrb[3].mxu1 }
 0x225   : > { %v4906_v57 = vld [vmem:[%s5270_s12 + $0x240] ss:$28 sps:$4 sm:$0xff]  }
 0x226   : > { %2725 = vmatmul.mubr.bf16.gmra.mrb[108].mxu1 %v4885_v53  ;;  %v1180_v53 = vpack.c.bf16 %v1123_v42, %v1122_v41  ;;  %v4936_v41 = vld [vmem:[%s5270_s12 + $0x88] ss:$28 sps:$4 sm:$0xff]  }
 0x227   : > { %2933 = vmatprep.mubr.bf16.mxu1 %v4891_v55  ;;  %v1125_v55 = vmul.f32 %v1009_v47, %v348_v48  ;;  %v4937_v48 = vld [vmem:[%s5270_s12 + $0xc0] ss:$28 sps:$4 sm:$0xff]  }
 0x229   : > { %v6162_v26 = vpop.f32.mrb[4].mxu1 }
 0x22a   : > { %v2520_v4 = vpop.f32.mrb[5].mxu1  ;;  %3079 = vmatmul.mubr.bf16.gmra.mrb[28].mxu0 %v4888_v58  ;;  %v1014_v58 = vpop.permute.xlu0 %1013 }
 0x22b   : > { %v6171_v8 = vpop.f32.mrb[6].mxu1  ;;  %3086 = vmatprep.mubr.bf16.mxu0 %v4892_v62  ;;  %v1181_v62 = vpack.c.bf16 %v1125_v55, %v1124_v7  ;;  %v1126_v63 = vmul.f32 %v1014_v58, %v349_v59  ;;  %v4940_v7 = vld [vmem:[%s5270_s12 + $0x390] ss:$28 sps:$4 sm:$0xff]  }
 0x22c   : > { %v2523_v11 = vpop.f32.mrb[7].mxu1  ;;  %v4943_v55 = vld [vmem:[%s5270_s12 + $0x3cc] ss:$28 sps:$4 sm:$0xff]  }
 0x22d   : > { %v1182_v6 = vpack.c.bf16 %v1126_v63, %v1126_v63  ;;  %v4916_v11 = vld [vmem:[%s5270_s12 + $0x2b4] ss:$28 sps:$4 sm:$0xff]  }
 0x22e   : > { %2934 = vmatmul.mubr.bf16.vlgmr.msra.gmra.mrb[84].mxu1 %v4889_v5  ;;  %v4913_v5 = vld [vmem:[%s5270_s12 + $0x584] ss:$28 sps:$4 sm:$0xff]   ;;  %v4942_v59 = vld [vmem:[%s5270_s12 + $0x130] ss:$28 sps:$4 sm:$0xff]  }
 0x22f   : > { %4322 = vmatpush3.bf16.msra.mxu1 %v6071_v0  ;;  %2941 = vmatprep.mubr.bf16.mxu1 %v4895_v9  ;;  %v344_v0 = vld [vmem:[%s6908_s0 + $0x348] sm:$0xff]  ;;  %v4912_v9 = vld [vmem:[%s5270_s12 + $0x278] ss:$28 sps:$4 sm:$0xff]  }
 0x230   : > { %4323 = vmatprep.subr.bf16.mxu1 %v1176_v12  ;;  %v1121_v32 = vmul.f32 %v989_v17, %v344_v0  ;;  %v4918_v17 = vld [vmem:[%s5270_s12 + $0x2b0] ss:$28 sps:$4 sm:$0xff]   ;;  %v4924_v0 = vld [vmem:[%s5270_s12 + $0x2e8] ss:$28 sps:$4 sm:$0xff]  }
 0x231   : > { %v6183_v25 = vpop.f32.mrb[8].mxu1 }
 0x232   : > { %v2528_v10 = vpop.f32.mrb[9].mxu1  ;;  %3087 = vmatmul.mubr.bf16.gmra.mrb[32].mxu0 %v4894_v56  ;;  %v1179_v40 = vpack.c.bf16 %v1121_v32, %v1120_v34  ;;  %v4931_v34 = vld [vmem:[%s5270_s12 + $0x18] ss:$28 sps:$4 sm:$0xff]  }
 0x233   : > { %4324 = vmatpush3.bf16.msra.mxu1 %v1176_v12  ;;  %v6192_v29 = vpop.f32.mrb[10].mxu1  ;;  %3094 = vmatprep.mubr.bf16.mxu0 %v4898_v19  ;;  %v2474_v12 = vsel %vm2472_vm0, %v1182_v6, 0  ;;  %v4922_v19 = vld [vmem:[%s5270_s12 + $0x2ec] ss:$28 sps:$4 sm:$0xff]  }
 0x234   : > { %4325 = vmatprep.subr.bf16.mxu1 %v1177_v1  ;;  %v2531_v31 = vpop.f32.mrb[11].mxu1 }
 0x236   : > { %2942 = vmatmul.mubr.bf16.gmra.mrb[88].mxu1 %v4897_v23  ;;  %v4925_v23 = vld [vmem:[%s5270_s12 + $0x5f4] ss:$28 sps:$4 sm:$0xff]  }
 0x237   : > { %4326 = vmatpush3.bf16.msra.mxu1 %v1177_v1  ;;  %2949 = vmatprep.mubr.bf16.mxu1 %v4901_v30 }
 0x238   : > { %4327 = vmatprep.subr.bf16.mxu1 %v1178_v20 }
 0x239   : > { %v6203_v46 = vpop.f32.mrb[12].mxu1 }
 0x23a   : > { %v2536_v52 = vpop.f32.mrb[13].mxu1  ;;  %3095 = vmatmul.mubr.bf16.gmra.mrb[36].mxu0 %v4900_v33  ;;  %v4930_v33 = vld [vmem:[%s5270_s12 + $0x320] ss:$28 sps:$4 sm:$0xff]  }
 0x23b   : > { %4328 = vmatpush3.bf16.msra.mxu1 %v1178_v20  ;;  %v6212_v49 = vpop.f32.mrb[14].mxu1  ;;  %3102 = vmatprep.mubr.bf16.mxu0 %v4904_v37  ;;  %v4935_v52 = vld [vmem:[%s5270_s12 + $0x358] ss:$28 sps:$4 sm:$0xff]  }
 0x23c   : > { %4329 = vmatprep.subr.bf16.mxu1 %v1179_v40  ;;  %v2539_v51 = vpop.f32.mrb[15].mxu1 }
 0x23d   : > { %v4941_v51 = vld [vmem:[%s5270_s12 + $0xf8] ss:$28 sps:$4 sm:$0xff]  }
 0x23e   : > { %2950 = vmatmul.mubr.bf16.gmra.mrb[92].mxu1 %v4903_v43  ;;  %v4938_v43 = vld [vmem:[%s5270_s12 + $0x394] ss:$28 sps:$4 sm:$0xff]  }
 0x23f   : > { %4330 = vmatpush3.bf16.msra.mxu1 %v1179_v40  ;;  %2957 = vmatprep.mubr.bf16.mxu1 %v4907_v50 }
 0x240   : > { %4331 = vmatprep.subr.bf16.mxu1 %v1180_v53 }
 0x241   : > { %v6220_v60 = vpop.f32.mrb[16].mxu1 }
 0x242   : > { %v2544_v2 = vpop.f32.mrb[17].mxu1  ;;  %3103 = vmatmul.mubr.bf16.gmra.mrb[40].mxu0 %v4906_v57 }
 0x243   : > { %4332 = vmatpush3.bf16.msra.mxu1 %v1180_v53  ;;  %v6223_v4 = vpop.f32.mrb[18].mxu1  ;;  %3110 = vmatprep.mubr.bf16.mxu0 %v4910_v18  ;;  %v4945_v2 = vld [vmem:[%s5270_s12 + $0x3c8] ss:$28 sps:$4 sm:$0xff]  }
 0x244   : > { %4333 = vmatprep.subr.bf16.mxu1 %v1181_v62  ;;  %v2547_v39 = vpop.f32.mrb[19].mxu1 }
 0x246   : > { %2958 = vmatmul.mubr.bf16.gmra.mrb[96].mxu1 %v4909_v3  ;;  %v4948_v3 = vld [vmem:[%s5270_s12 + $0x404] ss:$28 sps:$4 sm:$0xff]  }
 0x247   : > { %4334 = vmatpush3.bf16.msra.mxu1 %v1181_v62  ;;  %2965 = vmatprep.mubr.bf16.mxu1 %v4913_v5  ;;  %v4946_v62 = vld [vmem:[%s5270_s12 + $0x168] ss:$28 sps:$4 sm:$0xff]  }
 0x248   : > { %4593 = vmatprep.subr.msk.bf16.mxu1 %vm2472_vm0, %v1182_v6  ;;  %v4947_v6 = vld [vmem:[%s5270_s12 + $0x1a0] ss:$28 sps:$4 sm:$0xff]  }
 0x249   : > { %v6228_v45 = vpop.f32.mrb[20].mxu1 }
 0x24a   : > { %v2552_v13 = vpop.f32.mrb[21].mxu1  ;;  %3111 = vmatmul.mubr.bf16.gmra.mrb[44].mxu0 %v4912_v9 }
 0x24b   : > { %4336 = vmatpush3.bf16.msra.mxu1 %v2474_v12  ;;  %v6231_v56 = vpop.f32.mrb[22].mxu1  ;;  %3118 = vmatprep.mubr.bf16.mxu0 %v4916_v11  ;;  %v4951_v11 = vld [vmem:[%s5270_s12 + $0x1d8] ss:$28 sps:$4 sm:$0xff]   ;;  %v4950_v13 = vld [vmem:[%s5270_s12 + $0x400] ss:$28 sps:$4 sm:$0xff]  }
 0x24c   : > { %v2555_v16 = vpop.f32.mrb[23].mxu1 }
 0x24e   : > { %2966 = vmatmul.mubr.bf16.gmra.mrb[100].mxu1 %v4915_v14  ;;  %v4953_v14 = vld [vmem:[%s5270_s12 + $0x43c] ss:$28 sps:$4 sm:$0xff]  }
 0x24f   : > { %2973 = vmatprep.mubr.bf16.mxu1 %v4919_v15 }
 0x251   : > { %v6236_v1 = vpop.f32.mrb[24].mxu1 }
 0x252   : > { %v2560_v21 = vpop.f32.mrb[25].mxu1  ;;  %3119 = vmatmul.mubr.bf16.gmra.mrb[48].mxu0 %v4918_v17  ;;  %v4952_v17 = vld [vmem:[%s5270_s12 + $0x210] ss:$28 sps:$4 sm:$0xff]  }
 0x253   : > { %v6239_v10 = vpop.f32.mrb[26].mxu1  ;;  %3126 = vmatprep.mubr.bf16.mxu0 %v4922_v19  ;;  %v4956_v21 = vld [vmem:[%s5270_s12 + $0x248] ss:$28 sps:$4 sm:$0xff]  }
 0x254   : > { %v2563_v24 = vpop.f32.mrb[27].mxu1 }
 0x255   : > { %v4958_v24 = vld [vmem:[%s5270_s12 + $0x474] ss:$28 sps:$4 sm:$0xff]  }
 0x256   : > { %2974 = vmatmul.mubr.bf16.gmra.mrb[104].mxu1 %v4921_v22 }
 0x257   : > { %2981 = vmatprep.mubr.bf16.mxu1 %v4925_v23  ;;  %v4955_v23 = vld [vmem:[%s5270_s12 + $0x438] ss:$28 sps:$4 sm:$0xff]  }
 0x259   : > { %v6244_v30 = vpop.f32.mrb[28].mxu1 }
 0x25a   : > { %v2568_v31 = vpop.f32.mrb[29].mxu1  ;;  %3127 = vmatmul.mubr.bf16.gmra.mrb[52].mxu0 %v4924_v0 }
 0x25b   : > { %v6247_v20 = vpop.f32.mrb[30].mxu1  ;;  %3134 = vmatprep.mubr.bf16.mxu0 %v4928_v27  ;;  %v4957_v31 = vld [vmem:[%s5270_s12 + $0x280] ss:$28 sps:$4 sm:$0xff]  }
 0x25c   : > { %v2571_v32 = vpop.f32.mrb[31].mxu1 }
 0x25e   : > { %2982 = vmatmul.mubr.bf16.gmra.mrb[108].mxu1 %v4927_v28 }
 0x25f   : > { %4337 = vmatprep.mubr.msk.bf16.mxu1 %vm2387_vm1, %v4931_v34  ;;  %v4961_v34 = vld [vmem:[%s5270_s12 + $0x2b8] ss:$28 sps:$4 sm:$0xff]  }
 0x261   : > { %v6253_v36 = vpop.f32.mrb[32].mxu1 }
 0x262   : > { %v2576_v37 = vpop.f32.mrb[33].mxu1  ;;  %3135 = vmatmul.mubr.bf16.gmra.mrb[56].mxu0 %v4930_v33  ;;  %v4960_v33 = vld [vmem:[%s5270_s12 + $0x470] ss:$28 sps:$4 sm:$0xff]  }
 0x263   : > { %v6256_v40 = vpop.f32.mrb[34].mxu1  ;;  %3142 = vmatprep.mubr.bf16.mxu0 %v4933_v35  ;;  %v4963_v35 = vld [vmem:[%s5270_s12 + $0x4ac] ss:$28 sps:$4 sm:$0xff]  }
 0x264   : > { %v2579_v42 = vpop.f32.mrb[35].mxu1 }
 0x266   : > { %4338 = vmatmul.mubr.msk.bf16.vlgmr.msra.gmra.mrb[112].mxu1 %vm2387_vm1, %v4932_v38 }
 0x267   : > { %4341 = vmatprep.mubr.msk.bf16.mxu1 %vm2387_vm1, %v4936_v41  ;;  %v4962_v41 = vld [vmem:[%s5270_s12 + $0x2f0] ss:$28 sps:$4 sm:$0xff]  }
 0x269   : > { %v6263_v44 = vpop.f32.mrb[36].mxu1 }
 0x26a   : > { %v2584_v47 = vpop.f32.mrb[37].mxu1  ;;  %3143 = vmatmul.mubr.bf16.gmra.mrb[60].mxu0 %v4935_v52  ;;  %v4966_v52 = vld [vmem:[%s5270_s12 + $0x328] ss:$28 sps:$4 sm:$0xff]  }
 0x26b   : > { %v6266_v50 = vpop.f32.mrb[38].mxu1  ;;  %3150 = vmatprep.mubr.bf16.mxu0 %v4938_v43  ;;  %v4965_v47 = vld [vmem:[%s5270_s12 + $0x4a8] ss:$28 sps:$4 sm:$0xff]  }
 0x26c   : > { %v2587_v53 = vpop.f32.mrb[39].mxu1 }
 0x26e   : > { %4342 = vmatmul.mubr.msk.bf16.gmra.mrb[116].mxu1 %vm2387_vm1, %v4937_v48  ;;  %v4968_v48 = vld [vmem:[%s5270_s12 + $0x4e4] ss:$28 sps:$4 sm:$0xff]  }
 0x26f   : > { %4345 = vmatprep.mubr.msk.bf16.mxu1 %vm2387_vm1, %v4941_v51 }
 0x271   : > { %v6273_v57 = vpop.f32.mrb[40].mxu1 }
 0x272   : > { %v2592_v58 = vpop.f32.mrb[41].mxu1  ;;  %3151 = vmatmul.mubr.bf16.gmra.mrb[64].mxu0 %v4940_v7  ;;  %v4967_v7 = vld [vmem:[%s5270_s12 + $0x360] ss:$28 sps:$4 sm:$0xff]  }
 0x273   : > { %v6276_v18 = vpop.f32.mrb[42].mxu1  ;;  %3158 = vmatprep.mubr.bf16.mxu0 %v4943_v55  ;;  %v4971_v58 = vld [vmem:[%s5270_s12 + $0x398] ss:$28 sps:$4 sm:$0xff]  }
 0x274   : > { %v2595_v63 = vpop.f32.mrb[43].mxu1 }
 0x275   : > { %v4973_v63 = vld [vmem:[%s5270_s12 + $0x51c] ss:$28 sps:$4 sm:$0xff]  }
 0x276   : > { %4346 = vmatmul.mubr.msk.bf16.gmra.mrb[120].mxu1 %vm2387_vm1, %v4942_v59 }
 0x277   : > { %4349 = vmatprep.mubr.msk.bf16.mxu1 %vm2387_vm1, %v4946_v62  ;;  %v4970_v62 = vld [vmem:[%s5270_s12 + $0x4e0] ss:$28 sps:$4 sm:$0xff]  }
 0x279   : > { %v6283_v5 = vpop.f32.mrb[44].mxu1 }
 0x27a   : > { %v2600_v39 = vpop.f32.mrb[45].mxu1  ;;  %3159 = vmatmul.mubr.bf16.gmra.mrb[68].mxu0 %v4945_v2 }
 0x27b   : > { %v6286_v9 = vpop.f32.mrb[46].mxu1  ;;  %3166 = vmatprep.mubr.bf16.mxu0 %v4948_v3  ;;  %v4972_v39 = vld [vmem:[%s5270_s12 + $0x3d0] ss:$28 sps:$4 sm:$0xff]  }
 0x27c   : > { %v2603_v12 = vpop.f32.mrb[47].mxu1 }
 0x27e   : > { %4350 = vmatmul.mubr.msk.bf16.gmra.mrb[124].mxu1 %vm2387_vm1, %v4947_v6 }
 0x27f   : > { %4353 = vmatprep.mubr.msk.bf16.mxu1 %vm2387_vm1, %v4951_v11  ;;  %v4976_v11 = vld [vmem:[%s5270_s12 + $0x408] ss:$28 sps:$4 sm:$0xff]  }
 0x281   : > { %v6293_v15 = vpop.f32.mrb[48].mxu1 }
 0x282   : > { %v2608_v16 = vpop.f32.mrb[49].mxu1  ;;  %3167 = vmatmul.mubr.bf16.gmra.mrb[72].mxu0 %v4950_v13  ;;  %v4975_v13 = vld [vmem:[%s5270_s12 + $0x518] ss:$28 sps:$4 sm:$0xff]  }
 0x283   : > { %v6296_v19 = vpop.f32.mrb[50].mxu1  ;;  %3174 = vmatprep.mubr.bf16.mxu0 %v4953_v14  ;;  %v4978_v14 = vld [vmem:[%s5270_s12 + $0x554] ss:$28 sps:$4 sm:$0xff]  }
 0x284   : > { %v2611_v22 = vpop.f32.mrb[51].mxu1 }
 0x286   : > { %4354 = vmatmul.mubr.msk.bf16.gmra.mrb[128].mxu1 %vm2387_vm1, %v4952_v17 }
 0x287   : > { %4357 = vmatprep.mubr.msk.bf16.mxu1 %vm2387_vm1, %v4956_v21  ;;  %v4977_v21 = vld [vmem:[%s5270_s12 + $0x440] ss:$28 sps:$4 sm:$0xff]  }
 0x289   : > { %v6303_v0 = vpop.f32.mrb[52].mxu1 }
 0x28a   : > { %v2616_v27 = vpop.f32.mrb[53].mxu1  ;;  %3175 = vmatmul.mubr.bf16.gmra.mrb[76].mxu0 %v4955_v23  ;;  %v4981_v23 = vld [vmem:[%s5270_s12 + $0x478] ss:$28 sps:$4 sm:$0xff]  }
 0x28b   : > { %v6306_v28 = vpop.f32.mrb[54].mxu1  ;;  %3182 = vmatprep.mubr.bf16.mxu0 %v4958_v24  ;;  %v4980_v27 = vld [vmem:[%s5270_s12 + $0x550] ss:$28 sps:$4 sm:$0xff]  }
 0x28c   : > { %v2619_v32 = vpop.f32.mrb[55].mxu1 }
 0x28e   : > { %4358 = vmatmul.mubr.msk.bf16.gmra.mrb[132].mxu1 %vm2387_vm1, %v4957_v31  ;;  %v4983_v31 = vld [vmem:[%s5270_s12 + $0x58c] ss:$28 sps:$4 sm:$0xff]  }
 0x28f   : > { %4361 = vmatprep.mubr.msk.bf16.mxu1 %vm2387_vm1, %v4961_v34 }
 0x291   : > { %v6313_v37 = vpop.f32.mrb[56].mxu1 }
 0x292   : > { %v2624_v38 = vpop.f32.mrb[57].mxu1  ;;  %3183 = vmatmul.mubr.bf16.gmra.mrb[80].mxu0 %v4960_v33  ;;  %v4982_v33 = vld [vmem:[%s5270_s12 + $0x4b0] ss:$28 sps:$4 sm:$0xff]  }
 0x293   : > { %v6316_v42 = vpop.f32.mrb[58].mxu1  ;;  %3190 = vmatprep.mubr.bf16.mxu0 %v4963_v35  ;;  %v4986_v38 = vld [vmem:[%s5270_s12 + $0x4e8] ss:$28 sps:$4 sm:$0xff]  }
 0x294   : > { %v2627_v43 = vpop.f32.mrb[59].mxu1 }
 0x295   : > { %v4988_v43 = vld [vmem:[%s5270_s12 + $0x5c4] ss:$28 sps:$4 sm:$0xff]  }
 0x296   : > { %4362 = vmatmul.mubr.msk.bf16.gmra.mrb[136].mxu1 %vm2387_vm1, %v4962_v41 }
 0x297   : > { %4365 = vmatprep.mubr.msk.bf16.mxu1 %vm2387_vm1, %v4966_v52  ;;  %v4985_v52 = vld [vmem:[%s5270_s12 + $0x588] ss:$28 sps:$4 sm:$0xff]  }
 0x299   : > { %v6323_v51 = vpop.f32.mrb[60].mxu1 }
 0x29a   : > { %v2632_v53 = vpop.f32.mrb[61].mxu1  ;;  %3191 = vmatmul.mubr.bf16.gmra.mrb[84].mxu0 %v4965_v47 }
 0x29b   : > { %v6326_v55 = vpop.f32.mrb[62].mxu1  ;;  %3198 = vmatprep.mubr.bf16.mxu0 %v4968_v48  ;;  %v4987_v53 = vld [vmem:[%s5270_s12 + $0x520] ss:$28 sps:$4 sm:$0xff]  }
 0x29c   : > { %v2635_v59 = vpop.f32.mrb[63].mxu1 }
 0x29e   : > { %4366 = vmatmul.mubr.msk.bf16.gmra.mrb[140].mxu1 %vm2387_vm1, %v4967_v7 }
 0x29f   : > { %4369 = vmatprep.mubr.msk.bf16.mxu1 %vm2387_vm1, %v4971_v58  ;;  %v4991_v58 = vld [vmem:[%s5270_s12 + $0x558] ss:$28 sps:$4 sm:$0xff]  }
 0x2a1   : > { %v6333_v2 = vpop.f32.mrb[64].mxu1 }
 0x2a2   : > { %v2640_v3 = vpop.f32.mrb[65].mxu1  ;;  %3199 = vmatmul.mubr.bf16.gmra.mrb[88].mxu0 %v4970_v62  ;;  %v4990_v62 = vld [vmem:[%s5270_s12 + $0x5c0] ss:$28 sps:$4 sm:$0xff]  }
 0x2a3   : > { %v6336_v6 = vpop.f32.mrb[66].mxu1  ;;  %3206 = vmatprep.mubr.bf16.mxu0 %v4973_v63  ;;  %v4993_v63 = vld [vmem:[%s5270_s12 + $0x5fc] ss:$28 sps:$4 sm:$0xff]  }
 0x2a4   : > { %v2643_v12 = vpop.f32.mrb[67].mxu1 }
 0x2a6   : > { %4370 = vmatmul.mubr.msk.bf16.gmra.mrb[144].mxu1 %vm2387_vm1, %v4972_v39 }
 0x2a7   : > { %4373 = vmatprep.mubr.msk.bf16.mxu1 %vm2387_vm1, %v4976_v11  ;;  %v4992_v11 = vld [vmem:[%s5270_s12 + $0x590] ss:$28 sps:$4 sm:$0xff]  }
 0x2a9   : > { %v6343_v16 = vpop.f32.mrb[68].mxu1 }
 0x2aa   : > { %v2648_v17 = vpop.f32.mrb[69].mxu1  ;;  %3207 = vmatmul.mubr.bf16.gmra.mrb[92].mxu0 %v4975_v13  ;;  %v4996_v13 = vld [vmem:[%s5270_s12 + $0x5c8] ss:$28 sps:$4 sm:$0xff]  }
 0x2ab   : > { %v6346_v22 = vpop.f32.mrb[70].mxu1  ;;  %3214 = vmatprep.mubr.bf16.mxu0 %v4978_v14 }
 0x2ac   : > { %v2651_v24 = vpop.f32.mrb[71].mxu1 }
 0x2ad   : > { %v4995_v24 = vld [vmem:[%s5270_s12 + $0x5f8] ss:$28 sps:$4 sm:$0xff]  }
 0x2ae   : > { %4374 = vmatmul.mubr.msk.bf16.gmra.mrb[148].mxu1 %vm2387_vm1, %v4977_v21 }
 0x2af   : > { %4377 = vmatprep.mubr.msk.bf16.mxu1 %vm2387_vm1, %v4981_v23 }
 0x2b1   : > { %v6353_v34 = vpop.f32.mrb[72].mxu1 }
 0x2b2   : > { %v2656_v32 = vpop.f32.mrb[73].mxu1  ;;  %3215 = vmatmul.mubr.bf16.gmra.mrb[96].mxu0 %v4980_v27 }
 0x2b3   : > { %v6356_v35 = vpop.f32.mrb[74].mxu1  ;;  %3222 = vmatprep.mubr.bf16.mxu0 %v4983_v31 }
 0x2b4   : > { %v2659_v41 = vpop.f32.mrb[75].mxu1 }
 0x2b6   : > { %4378 = vmatmul.mubr.msk.bf16.gmra.mrb[152].mxu1 %vm2387_vm1, %v4982_v33  ;;  %v4997_v33 = vld [vmem:[%s5270_s12 + $0x600] ss:$28 sps:$4 sm:$0xff]   ;;  %s4597_s12 = smul.u32 448, %s5266_s8 }
 0x2b7   : > { %4381 = vmatprep.mubr.msk.bf16.mxu1 %vm2387_vm1, %v4986_v38  ;;  %s3568_s8 = smul.u32 (%p5216_p9), 56, %s5104_s15 }
 0x2b8   : > { %s6505_s7 = scalar_lea.vmem [#allocation4], %s4597_s12  }
 0x2b9   : > { %v6363_v47 = vpop.f32.mrb[76].mxu1  ;;  %s3569_s22 = ssub.s32 (%p5216_p9), 111, %s3568_s8 }
 0x2ba   : > { %v2664_v48 = vpop.f32.mrb[77].mxu1  ;;  %3223 = vmatmul.mubr.bf16.gmra.mrb[100].mxu0 %v4985_v52  ;;  %p3570_p8 = scmp.lt.s32.totalorder (%p5216_p9), %s3569_s22, 56 }
 0x2bb   : > { %v6366_v7 = vpop.f32.mrb[78].mxu1  ;;  %3230 = vmatprep.mubr.bf16.mxu0 %v4988_v43 }
 0x2bc   : > { %v2667_v59 = vpop.f32.mrb[79].mxu1 }
 0x2be   : > { %4382 = vmatmul.mubr.msk.bf16.gmra.mrb[156].mxu1 %vm2387_vm1, %v4987_v53 }
 0x2bf   : > { %4385 = vmatprep.mubr.msk.bf16.mxu1 %vm2387_vm1, %v4991_v58 }
 0x2c1   : > { %v6373_v3 = vpop.f32.mrb[80].mxu1 }
 0x2c2   : > { %v2672_v39 = vpop.f32.mrb[81].mxu1  ;;  %3231 = vmatmul.mubr.bf16.gmra.mrb[104].mxu0 %v4990_v62 }
 0x2c3   : > { %v6376_v12 = vpop.f32.mrb[82].mxu1  ;;  %3238 = vmatprep.mubr.bf16.mxu0 %v4993_v63 }
 0x2c4   : > { %v2675_v14 = vpop.f32.mrb[83].mxu1 }
 0x2c5   : > { %v3024_v17 = vpop.f32.mrb[0].mxu0 }
 0x2c6   : > { %v6380_v21 = vadd.f32 %v3024_v17, %v6148_v61  ;;  %v3026_v23 = vpop.f32.mrb[1].mxu0  ;;  %4386 = vmatmul.mubr.msk.bf16.gmra.mrb[160].mxu1 %vm2387_vm1, %v4992_v11 }
 0x2c7   : > { %v3027_v27 = vpop.f32.mrb[2].mxu0  ;;  %4389 = vmatprep.mubr.msk.bf16.mxu1 %vm2387_vm1, %v4996_v13 }
 0x2c8   : > { %v6386_v31 = vadd.f32 %v3027_v27, %v6151_v54  ;;  %v3029_v32 = vpop.f32.mrb[3].mxu0 }
 0x2ca   : > { %3239 = vmatmul.mubr.bf16.gmra.mrb[108].mxu0 %v4995_v24 }
 0x2cd   : > { %v3032_v38 = vpop.f32.mrb[4].mxu0 }
 0x2ce   : > { %v6390_v41 = vadd.f32 %v3032_v38, %v6162_v26  ;;  %v3034_v52 = vpop.f32.mrb[5].mxu0  ;;  %4390 = vmatmul.mubr.msk.bf16.gmra.mrb[164].mxu1 %vm2387_vm1, %v4997_v33 }
 0x2cf   : > { %v3035_v61 = vpop.f32.mrb[6].mxu0 }
 0x2d0   : > { %v6394_v43 = vadd.f32 %v3035_v61, %v6171_v8  ;;  %v3037_v48 = vpop.f32.mrb[7].mxu0 }
 0x2d5   : > { %v3040_v53 = vpop.f32.mrb[8].mxu0 }
 0x2d6   : > { %v6397_v58 = vadd.f32 %v3040_v53, %v6183_v25  ;;  %v3042_v54 = vpop.f32.mrb[9].mxu0 }
 0x2d7   : > { %v3043_v59 = vpop.f32.mrb[10].mxu0 }
 0x2d8   : > { %v6400_v62 = vadd.f32 %v3043_v59, %v6192_v29  ;;  %v3045_v63 = vpop.f32.mrb[11].mxu0 }
 0x2dd   : > { %v3048_v26 = vpop.f32.mrb[12].mxu0 }
 0x2de   : > { %v6403_v39 = vadd.f32 %v3048_v26, %v6203_v46  ;;  %v3050_v11 = vpop.f32.mrb[13].mxu0 }
 0x2df   : > { %v3051_v13 = vpop.f32.mrb[14].mxu0 }
 0x2e0   : > { %v6406_v8 = vadd.f32 %v3051_v13, %v6212_v49  ;;  %v3053_v14 = vpop.f32.mrb[15].mxu0 }
 0x2e5   : > { %v3056_v17 = vpop.f32.mrb[16].mxu0 }
 0x2e6   : > { %v6409_v25 = vadd.f32 %v3056_v17, %v6220_v60  ;;  %v3058_v23 = vpop.f32.mrb[17].mxu0 }
 0x2e7   : > { %v3059_v24 = vpop.f32.mrb[18].mxu0 }
 0x2e8   : > { %v6412_v29 = vadd.f32 %v3059_v24, %v6223_v4  ;;  %v3061_v27 = vpop.f32.mrb[19].mxu0 }
 0x2ed   : > { %v3064_v32 = vpop.f32.mrb[20].mxu0 }
 0x2ee   : > { %v6415_v46 = vadd.f32 %v3064_v32, %v6228_v45  ;;  %v3066_v33 = vpop.f32.mrb[21].mxu0 }
 0x2ef   : > { %v3067_v38 = vpop.f32.mrb[22].mxu0 }
 0x2f0   : > { %v6418_v49 = vadd.f32 %v3067_v38, %v6231_v56  ;;  %v3069_v52 = vpop.f32.mrb[23].mxu0 }
 0x2f5   : > { %v3072_v61 = vpop.f32.mrb[24].mxu0 }
 0x2f6   : > { %v6421_v60 = vadd.f32 %v3072_v61, %v6236_v1  ;;  %v3074_v48 = vpop.f32.mrb[25].mxu0 }
 0x2f7   : > { %v3075_v53 = vpop.f32.mrb[26].mxu0 }
 0x2f8   : > { %v6424_v4 = vadd.f32 %v3075_v53, %v6239_v10  ;;  %v3077_v54 = vpop.f32.mrb[27].mxu0 }
 0x2fd   : > { %v3080_v59 = vpop.f32.mrb[28].mxu0 }
 0x2fe   : > { %v6427_v45 = vadd.f32 %v3080_v59, %v6244_v30  ;;  %v3082_v63 = vpop.f32.mrb[29].mxu0 }
 0x2ff   : > { %v3083_v26 = vpop.f32.mrb[30].mxu0 }
 0x300   : > { %v6430_v56 = vadd.f32 %v3083_v26, %v6247_v20  ;;  %v3085_v11 = vpop.f32.mrb[31].mxu0 }
 0x301   : > { %v6432_v13 = vpop.f32.mrb[84].mxu1 }
 0x302   : > { %v2937_v1 = vpop.f32.mrb[85].mxu1 }
 0x303   : > { %v6434_v14 = vpop.f32.mrb[86].mxu1 }
 0x304   : > { %v2940_v17 = vpop.f32.mrb[87].mxu1 }
 0x305   : > { %v3088_v23 = vpop.f32.mrb[32].mxu0 }
 0x306   : > { %v6437_v10 = vadd.f32 %v3088_v23, %v6253_v36  ;;  %v3090_v24 = vpop.f32.mrb[33].mxu0 }
 0x307   : > { %v3091_v27 = vpop.f32.mrb[34].mxu0 }
 0x308   : > { %v6440_v30 = vadd.f32 %v3091_v27, %v6256_v40  ;;  %v3093_v32 = vpop.f32.mrb[35].mxu0 }
 0x309   : > { %v6442_v33 = vpop.f32.mrb[88].mxu1 }
 0x30a   : > { %v2945_v20 = vpop.f32.mrb[89].mxu1 }
 0x30b   : > { %v6444_v38 = vpop.f32.mrb[90].mxu1 }
 0x30c   : > { %v2948_v52 = vpop.f32.mrb[91].mxu1 }
 0x30d   : > { %v3096_v61 = vpop.f32.mrb[36].mxu0 }
 0x30e   : > { %v6447_v48 = vadd.f32 %v3096_v61, %v6263_v44  ;;  %v3098_v53 = vpop.f32.mrb[37].mxu0 }
 0x30f   : > { %v3099_v54 = vpop.f32.mrb[38].mxu0 }
 0x310   : > { %v6450_v36 = vadd.f32 %v3099_v54, %v6266_v50  ;;  %v3101_v59 = vpop.f32.mrb[39].mxu0 }
 0x311   : > { %v6452_v63 = vpop.f32.mrb[92].mxu1 }
 0x312   : > { %v2953_v40 = vpop.f32.mrb[93].mxu1 }
 0x313   : > { %v6454_v26 = vpop.f32.mrb[94].mxu1 }
 0x314   : > { %v2956_v11 = vpop.f32.mrb[95].mxu1 }
 0x315   : > { %v3104_v1 = vpop.f32.mrb[40].mxu0 }
 0x316   : > { %v6457_v17 = vadd.f32 %v3104_v1, %v6273_v57  ;;  %v3106_v23 = vpop.f32.mrb[41].mxu0 }
 0x317   : > { %v3107_v24 = vpop.f32.mrb[42].mxu0 }
 0x318   : > { %v6460_v44 = vadd.f32 %v3107_v24, %v6276_v18  ;;  %v3109_v27 = vpop.f32.mrb[43].mxu0 }
 0x319   : > { %v6462_v32 = vpop.f32.mrb[96].mxu1 }
 0x31a   : > { %v2961_v50 = vpop.f32.mrb[97].mxu1 }
 0x31b   : > { %v6464_v20 = vpop.f32.mrb[98].mxu1 }
 0x31c   : > { %v2964_v52 = vpop.f32.mrb[99].mxu1 }
 0x31d   : > { %v3112_v61 = vpop.f32.mrb[44].mxu0 }
 0x31e   : > { %v6467_v53 = vadd.f32 %v3112_v61, %v6283_v5  ;;  %v3114_v54 = vpop.f32.mrb[45].mxu0 }
 0x31f   : > { %v3115_v59 = vpop.f32.mrb[46].mxu0 }
 0x320   : > { %v6470_v57 = vadd.f32 %v3115_v59, %v6286_v9  ;;  %v3117_v40 = vpop.f32.mrb[47].mxu0 }
 0x321   : > { %v6472_v11 = vpop.f32.mrb[100].mxu1 }
 0x322   : > { %v2969_v18 = vpop.f32.mrb[101].mxu1 }
 0x323   : > { %v6474_v1 = vpop.f32.mrb[102].mxu1 }
 0x324   : > { %6914 = vst [vmem:[#allocation6_spill] sm:$0xff] %v6474_v1  ;;  %v2972_v23 = vpop.f32.mrb[103].mxu1 }
 0x325   : > { %v3120_v24 = vpop.f32.mrb[48].mxu0 }
 0x326   : > { %v6477_v27 = vadd.f32 %v3120_v24, %v6293_v15  ;;  %v3122_v50 = vpop.f32.mrb[49].mxu0 }
 0x327   : > { %v3123_v52 = vpop.f32.mrb[50].mxu0 }
 0x328   : > { %v6480_v5 = vadd.f32 %v3123_v52, %v6296_v19  ;;  %v3125_v61 = vpop.f32.mrb[51].mxu0 }
 0x329   : > { %v6482_v9 = vpop.f32.mrb[104].mxu1 }
 0x32a   : > { %6915 = vst [vmem:[#allocation7_spill] sm:$0xff] %v6482_v9  ;;  %v2977_v54 = vpop.f32.mrb[105].mxu1 }
 0x32b   : > { %v6484_v59 = vpop.f32.mrb[106].mxu1 }
 0x32c   : > { %6916 = vst [vmem:[#allocation8_spill] sm:$0xff] %v6484_v59  ;;  %v2980_v40 = vpop.f32.mrb[107].mxu1 }
 0x32d   : > { %v3128_v18 = vpop.f32.mrb[52].mxu0 }
 0x32e   : > { %v6487_v23 = vadd.f32 %v3128_v18, %v6303_v0  ;;  %v3130_v1 = vpop.f32.mrb[53].mxu0 }
 0x32f   : > { %v3131_v15 = vpop.f32.mrb[54].mxu0 }
 0x330   : > { %v6490_v24 = vadd.f32 %v3131_v15, %v6306_v28  ;;  %v3133_v50 = vpop.f32.mrb[55].mxu0 }
 0x331   : > { %v6492_v19 = vpop.f32.mrb[108].mxu1 }
 0x332   : > { %v2985_v52 = vpop.f32.mrb[109].mxu1 }
 0x333   : > { %v6494_v61 = vpop.f32.mrb[110].mxu1 }
 0x334   : > { %6917 = vst [vmem:[#allocation9_spill] sm:$0xff] %v6494_v61  ;;  %v2988_v9 = vpop.f32.mrb[111].mxu1 }
 0x335   : > { %v3136_v54 = vpop.f32.mrb[56].mxu0 }
 0x336   : > { %v6498_v40 = vadd.f32 %v3136_v54, %v6313_v37  ;;  %v3138_v59 = vpop.f32.mrb[57].mxu0 }
 0x337   : > { %v3139_v0 = vpop.f32.mrb[58].mxu0 }
 0x338   : > { %v6501_v1 = vadd.f32 %v3139_v0, %v6316_v42  ;;  %v3141_v18 = vpop.f32.mrb[59].mxu0 }
 0x339   : > { %v4339_v28 = vpop.f32.mrb[112].mxu1 }
 0x33a   : > { %v3290_v15 = vadd.f32 %v6390_v41, %v4339_v28  ;;  %v3281_v50 = vpop.f32.mrb[113].mxu1 }
 0x33b   : > { %v3282_v52 = vadd.f32 %v6380_v21, %v3281_v50  ;;  %v4340_v61 = vpop.f32.mrb[114].mxu1 }
 0x33c   : > { %3507 = vst.msk [vmem:[%s6505_s7 + $0x10] sm:$0xff] %vm3504_vm2, %v3290_v15  ;;  %v3293_v37 = vadd.f32 %v6394_v43, %v4340_v61  ;;  %v3284_v42 = vpop.f32.mrb[115].mxu1 }
 0x33d   : > { %3505 = vst.msk [vmem:[%s6505_s7] sm:$0xff] %vm3504_vm2, %v3282_v52  ;;  %v3285_v41 = vadd.f32 %v6386_v31, %v3284_v42  ;;  %v3144_v9 = vpop.f32.mrb[60].mxu0 }
 0x33e   : > { %3508 = vst.msk [vmem:[%s6505_s7 + $0x18] sm:$0xff] %vm3504_vm2, %v3293_v37  ;;  %v6516_v21 = vadd.f32 %v3144_v9, %v6323_v51  ;;  %v3146_v59 = vpop.f32.mrb[61].mxu0 }
 0x33f   : > { %3506 = vst.msk [vmem:[%s6505_s7 + $0x8] sm:$0xff] %vm3504_vm2, %v3285_v41  ;;  %v3147_v54 = vpop.f32.mrb[62].mxu0 }
 0x340   : > { %v6521_v43 = vadd.f32 %v3147_v54, %v6326_v55  ;;  %v3149_v61 = vpop.f32.mrb[63].mxu0 }
 0x341   : > { %v4343_v0 = vpop.f32.mrb[116].mxu1 }
 0x342   : > { %v3306_v31 = vadd.f32 %v6403_v39, %v4343_v0  ;;  %v3297_v18 = vpop.f32.mrb[117].mxu1 }
 0x343   : > { %v3298_v28 = vadd.f32 %v6397_v58, %v3297_v18  ;;  %v4344_v15 = vpop.f32.mrb[118].mxu1 }
 0x344   : > { %3511 = vst.msk [vmem:[%s6505_s7 + $0x30] sm:$0xff] %vm3504_vm2, %v3306_v31  ;;  %v3309_v51 = vadd.f32 %v6406_v8, %v4344_v15  ;;  %v3300_v50 = vpop.f32.mrb[119].mxu1 }
 0x345   : > { %3509 = vst.msk [vmem:[%s6505_s7 + $0x20] sm:$0xff] %vm3504_vm2, %v3298_v28  ;;  %v3301_v55 = vadd.f32 %v6400_v62, %v3300_v50  ;;  %v3152_v52 = vpop.f32.mrb[64].mxu0 }
 0x346   : > { %3512 = vst.msk [vmem:[%s6505_s7 + $0x38] sm:$0xff] %vm3504_vm2, %v3309_v51  ;;  %v6534_v39 = vadd.f32 %v3152_v52, %v6333_v2  ;;  %v3154_v37 = vpop.f32.mrb[65].mxu0 }
 0x347   : > { %3510 = vst.msk [vmem:[%s6505_s7 + $0x28] sm:$0xff] %vm3504_vm2, %v3301_v55  ;;  %v3155_v58 = vpop.f32.mrb[66].mxu0 }
 0x348   : > { %v6539_v8 = vadd.f32 %v3155_v58, %v6336_v6  ;;  %v3157_v42 = vpop.f32.mrb[67].mxu0 }
 0x349   : > { %v4347_v41 = vpop.f32.mrb[120].mxu1 }
 0x34a   : > { %v3322_v62 = vadd.f32 %v6415_v46, %v4347_v41  ;;  %v3313_v9 = vpop.f32.mrb[121].mxu1 }
 0x34b   : > { %v3314_v59 = vadd.f32 %v6409_v25, %v3313_v9  ;;  %v4348_v54 = vpop.f32.mrb[122].mxu1 }
 0x34c   : > { %3515 = vst.msk [vmem:[%s6505_s7 + $0x50] sm:$0xff] %vm3504_vm2, %v3322_v62  ;;  %v3325_v2 = vadd.f32 %v6418_v49, %v4348_v54  ;;  %v3316_v61 = vpop.f32.mrb[123].mxu1 }
 0x34d   : > { %3513 = vst.msk [vmem:[%s6505_s7 + $0x40] sm:$0xff] %vm3504_vm2, %v3314_v59  ;;  %v3317_v6 = vadd.f32 %v6412_v29, %v3316_v61  ;;  %v3160_v0 = vpop.f32.mrb[68].mxu0 }
 0x34e   : > { %3516 = vst.msk [vmem:[%s6505_s7 + $0x58] sm:$0xff] %vm3504_vm2, %v3325_v2  ;;  %v6552_v46 = vadd.f32 %v3160_v0, %v6343_v16  ;;  %v3162_v31 = vpop.f32.mrb[69].mxu0 }
 0x34f   : > { %3514 = vst.msk [vmem:[%s6505_s7 + $0x48] sm:$0xff] %vm3504_vm2, %v3317_v6  ;;  %v3163_v25 = vpop.f32.mrb[70].mxu0 }
 0x350   : > { %v6557_v49 = vadd.f32 %v3163_v25, %v6346_v22  ;;  %v3165_v18 = vpop.f32.mrb[71].mxu0 }
 0x351   : > { %v4351_v28 = vpop.f32.mrb[124].mxu1 }
 0x352   : > { %v3338_v29 = vadd.f32 %v6427_v45, %v4351_v28  ;;  %v3329_v15 = vpop.f32.mrb[125].mxu1 }
 0x353   : > { %v3330_v51 = vadd.f32 %v6421_v60, %v3329_v15  ;;  %v4352_v50 = vpop.f32.mrb[126].mxu1 }
 0x354   : > { %3519 = vst.msk [vmem:[%s6505_s7 + $0x70] sm:$0xff] %vm3504_vm2, %v3338_v29  ;;  %v3341_v16 = vadd.f32 %v6430_v56, %v4352_v50  ;;  %v3332_v55 = vpop.f32.mrb[127].mxu1 }
 0x355   : > { %3517 = vst.msk [vmem:[%s6505_s7 + $0x60] sm:$0xff] %vm3504_vm2, %v3330_v51  ;;  %v3333_v22 = vadd.f32 %v6424_v4, %v3332_v55  ;;  %v3168_v52 = vpop.f32.mrb[72].mxu0 }
 0x356   : > { %3520 = vst.msk [vmem:[%s6505_s7 + $0x78] sm:$0xff] %vm3504_vm2, %v3341_v16  ;;  %v6570_v45 = vadd.f32 %v3168_v52, %v6353_v34  ;;  %v3170_v37 = vpop.f32.mrb[73].mxu0 }
 0x357   : > { %3518 = vst.msk [vmem:[%s6505_s7 + $0x68] sm:$0xff] %vm3504_vm2, %v3333_v22  ;;  %v3171_v60 = vpop.f32.mrb[74].mxu0 }
 0x358   : > { %v6575_v56 = vadd.f32 %v3171_v60, %v6356_v35  ;;  %v3173_v58 = vpop.f32.mrb[75].mxu0 }
 0x359   : > { %v4355_v42 = vpop.f32.mrb[128].mxu1 }
 0x35a   : > { %v3354_v4 = vadd.f32 %v6447_v48, %v4355_v42  ;;  %v3345_v41 = vpop.f32.mrb[129].mxu1 }
 0x35b   : > { %v3346_v62 = vadd.f32 %v6437_v10, %v3345_v41  ;;  %v4356_v9 = vpop.f32.mrb[130].mxu1 }
 0x35c   : > { %3523 = vst.msk [vmem:[%s6505_s7 + $0x90] sm:$0xff] %vm3504_vm2, %v3354_v4  ;;  %v3357_v34 = vadd.f32 %v6450_v36, %v4356_v9  ;;  %v3348_v59 = vpop.f32.mrb[131].mxu1 }
 0x35d   : > { %3521 = vst.msk [vmem:[%s6505_s7 + $0x80] sm:$0xff] %vm3504_vm2, %v3346_v62  ;;  %v3349_v35 = vadd.f32 %v6440_v30, %v3348_v59  ;;  %v3176_v54 = vpop.f32.mrb[76].mxu0 }
 0x35e   : > { %3524 = vst.msk [vmem:[%s6505_s7 + $0x98] sm:$0xff] %vm3504_vm2, %v3357_v34  ;;  %v6588_v48 = vadd.f32 %v3176_v54, %v6363_v47  ;;  %v3178_v2 = vpop.f32.mrb[77].mxu0 }
 0x35f   : > { %3522 = vst.msk [vmem:[%s6505_s7 + $0x88] sm:$0xff] %vm3504_vm2, %v3349_v35  ;;  %v3179_v10 = vpop.f32.mrb[78].mxu0 }
 0x360   : > { %v6593_v36 = vadd.f32 %v3179_v10, %v6366_v7  ;;  %v3181_v61 = vpop.f32.mrb[79].mxu0 }
 0x361   : > { %v4359_v6 = vpop.f32.mrb[132].mxu1 }
 0x362   : > { %v3370_v30 = vadd.f32 %v6467_v53, %v4359_v6  ;;  %v3361_v0 = vpop.f32.mrb[133].mxu1 }
 0x363   : > { %v3362_v31 = vadd.f32 %v6457_v17, %v3361_v0  ;;  %v4360_v25 = vpop.f32.mrb[134].mxu1 }
 0x364   : > { %3527 = vst.msk [vmem:[%s6505_s7 + $0xb0] sm:$0xff] %vm3504_vm2, %v3370_v30  ;;  %v3373_v47 = vadd.f32 %v6470_v57, %v4360_v25  ;;  %v3364_v18 = vpop.f32.mrb[135].mxu1 }
 0x365   : > { %3525 = vst.msk [vmem:[%s6505_s7 + $0xa0] sm:$0xff] %vm3504_vm2, %v3362_v31  ;;  %v3365_v7 = vadd.f32 %v6460_v44, %v3364_v18  ;;  %v3184_v28 = vpop.f32.mrb[80].mxu0 }
 0x366   : > { %3528 = vst.msk [vmem:[%s6505_s7 + $0xb8] sm:$0xff] %vm3504_vm2, %v3373_v47  ;;  %v6606_v53 = vadd.f32 %v3184_v28, %v6373_v3  ;;  %v3186_v29 = vpop.f32.mrb[81].mxu0 }
 0x367   : > { %3526 = vst.msk [vmem:[%s6505_s7 + $0xa8] sm:$0xff] %vm3504_vm2, %v3365_v7  ;;  %v3187_v17 = vpop.f32.mrb[82].mxu0 }
 0x368   : > { %v6611_v57 = vadd.f32 %v3187_v17, %v6376_v12  ;;  %v3189_v15 = vpop.f32.mrb[83].mxu0 }
 0x369   : > { %v4363_v51 = vpop.f32.mrb[136].mxu1 }
 0x36a   : > { %v3386_v44 = vadd.f32 %v6487_v23, %v4363_v51  ;;  %v3377_v50 = vpop.f32.mrb[137].mxu1 }
 0x36b   : > { %v3378_v16 = vadd.f32 %v6477_v27, %v3377_v50  ;;  %v4364_v55 = vpop.f32.mrb[138].mxu1 }
 0x36c   : > { %3531 = vst.msk [vmem:[%s6505_s7 + $0xd0] sm:$0xff] %vm3504_vm2, %v3386_v44  ;;  %v3389_v3 = vadd.f32 %v6490_v24, %v4364_v55  ;;  %v3380_v22 = vpop.f32.mrb[139].mxu1 }
 0x36d   : > { %3529 = vst.msk [vmem:[%s6505_s7 + $0xc0] sm:$0xff] %vm3504_vm2, %v3378_v16  ;;  %v3381_v12 = vadd.f32 %v6480_v5, %v3380_v22  ;;  %v3192_v52 = vpop.f32.mrb[84].mxu0 }
 0x36e   : > { %3532 = vst.msk [vmem:[%s6505_s7 + $0xd8] sm:$0xff] %vm3504_vm2, %v3389_v3  ;;  %v4467_v23 = vadd.f32 %v3192_v52, %v6432_v13  ;;  %v3194_v37 = vpop.f32.mrb[85].mxu0 }
 0x36f   : > { %3530 = vst.msk [vmem:[%s6505_s7 + $0xc8] sm:$0xff] %vm3504_vm2, %v3381_v12  ;;  %v3195_v27 = vpop.f32.mrb[86].mxu0  ;;  %v6918_v12 = vld [vmem:[#allocation6_spill] sm:$0xff] }
 0x370   : > { %v4468_v60 = vadd.f32 %v3195_v27, %v6434_v14  ;;  %v3197_v24 = vpop.f32.mrb[87].mxu0 }
 0x371   : > { %v4367_v58 = vpop.f32.mrb[140].mxu1 }
 0x372   : > { %v3402_v42 = vadd.f32 %v6516_v21, %v4367_v58  ;;  %v3393_v4 = vpop.f32.mrb[141].mxu1 }
 0x373   : > { %v3394_v5 = vadd.f32 %v6498_v40, %v3393_v4  ;;  %v4368_v41 = vpop.f32.mrb[142].mxu1 }
 0x374   : > { %3535 = vst.msk [vmem:[%s6505_s7 + $0xf0] sm:$0xff] %vm3504_vm2, %v3402_v42  ;;  %v3405_v13 = vadd.f32 %v6521_v43, %v4368_v41  ;;  %v3396_v62 = vpop.f32.mrb[143].mxu1 }
 0x375   : > { %3533 = vst.msk [vmem:[%s6505_s7 + $0xe0] sm:$0xff] %vm3504_vm2, %v3394_v5  ;;  %v3397_v9 = vadd.f32 %v6501_v1, %v3396_v62  ;;  %v3200_v14 = vpop.f32.mrb[88].mxu0  ;;  %v6919_v5 = vld [vmem:[#allocation7_spill] sm:$0xff] }
 0x376   : > { %3536 = vst.msk [vmem:[%s6505_s7 + $0xf8] sm:$0xff] %vm3504_vm2, %v3405_v13  ;;  %v6638_v21 = vadd.f32 %v3200_v14, %v6442_v33  ;;  %v3202_v34 = vpop.f32.mrb[89].mxu0 }
 0x377   : > { %3534 = vst.msk [vmem:[%s6505_s7 + $0xe8] sm:$0xff] %vm3504_vm2, %v3397_v9  ;;  %v3203_v40 = vpop.f32.mrb[90].mxu0  ;;  %v6920_v9 = vld [vmem:[#allocation8_spill] sm:$0xff] }
 0x378   : > { %v6643_v43 = vadd.f32 %v3203_v40, %v6444_v38  ;;  %v3205_v59 = vpop.f32.mrb[91].mxu0 }
 0x379   : > { %v4371_v35 = vpop.f32.mrb[144].mxu1 }
 0x37a   : > { %v3418_v1 = vadd.f32 %v6552_v46, %v4371_v35  ;;  %v3409_v54 = vpop.f32.mrb[145].mxu1 }
 0x37b   : > { %v3410_v2 = vadd.f32 %v6534_v39, %v3409_v54  ;;  %v4372_v10 = vpop.f32.mrb[146].mxu1 }
 0x37c   : > { %3539 = vst.msk [vmem:[%s6505_s7 + $0x110] sm:$0xff] %vm3504_vm2, %v3418_v1  ;;  %v3421_v33 = vadd.f32 %v6557_v49, %v4372_v10  ;;  %v3412_v61 = vpop.f32.mrb[147].mxu1 }
 0x37d   : > { %3537 = vst.msk [vmem:[%s6505_s7 + $0x100] sm:$0xff] %vm3504_vm2, %v3410_v2  ;;  %v3413_v38 = vadd.f32 %v6539_v8, %v3412_v61  ;;  %v3208_v6 = vpop.f32.mrb[92].mxu0 }
 0x37e   : > { %3540 = vst.msk [vmem:[%s6505_s7 + $0x118] sm:$0xff] %vm3504_vm2, %v3421_v33  ;;  %v4471_v46 = vadd.f32 %v3208_v6, %v6452_v63  ;;  %v3210_v30 = vpop.f32.mrb[93].mxu0  ;;  %v6921_v6 = vld [vmem:[#allocation9_spill] sm:$0xff] }
 0x37f   : > { %3538 = vst.msk [vmem:[%s6505_s7 + $0x108] sm:$0xff] %vm3504_vm2, %v3413_v38  ;;  %v3211_v39 = vpop.f32.mrb[94].mxu0 }
 0x380   : > { %v4472_v0 = vadd.f32 %v3211_v39, %v6454_v26  ;;  %v3213_v49 = vpop.f32.mrb[95].mxu0 }
 0x381   : > { %v4375_v31 = vpop.f32.mrb[148].mxu1 }
 0x382   : > { %v3434_v25 = vadd.f32 %v6588_v48, %v4375_v31  ;;  %v3425_v47 = vpop.f32.mrb[149].mxu1 }
 0x383   : > { %v3426_v8 = vadd.f32 %v6570_v45, %v3425_v47  ;;  %v4376_v18 = vpop.f32.mrb[150].mxu1 }
 0x384   : > { %3543 = vst.msk [vmem:[%s6505_s7 + $0x130] sm:$0xff] %vm3504_vm2, %v3434_v25  ;;  %v3437_v63 = vadd.f32 %v6593_v36, %v4376_v18  ;;  %v3428_v7 = vpop.f32.mrb[151].mxu1 }
 0x385   : > { %3541 = vst.msk [vmem:[%s6505_s7 + $0x120] sm:$0xff] %vm3504_vm2, %v3426_v8  ;;  %v3429_v28 = vadd.f32 %v6575_v56, %v3428_v7  ;;  %v3216_v26 = vpop.f32.mrb[96].mxu0 }
 0x386   : > { %3544 = vst.msk [vmem:[%s6505_s7 + $0x138] sm:$0xff] %vm3504_vm2, %v3437_v63  ;;  %v4473_v48 = vadd.f32 %v3216_v26, %v6462_v32  ;;  %v3218_v29 = vpop.f32.mrb[97].mxu0 }
 0x387   : > { %3542 = vst.msk [vmem:[%s6505_s7 + $0x128] sm:$0xff] %vm3504_vm2, %v3429_v28  ;;  %v3219_v45 = vpop.f32.mrb[98].mxu0 }
 0x388   : > { %v4474_v17 = vadd.f32 %v3219_v45, %v6464_v20  ;;  %v3221_v36 = vpop.f32.mrb[99].mxu0 }
 0x389   : > { %v4379_v15 = vpop.f32.mrb[152].mxu1 }
 0x38a   : > { %v3450_v51 = vadd.f32 %v4467_v23, %v4379_v15  ;;  %v3441_v44 = vpop.f32.mrb[153].mxu1 }
 0x38b   : > { %v3442_v56 = vadd.f32 %v6606_v53, %v3441_v44  ;;  %v4380_v50 = vpop.f32.mrb[154].mxu1 }
 0x38c   : > { %3547 = vst.msk [vmem:[%s6505_s7 + $0x150] sm:$0xff] %vm3504_vm2, %v3450_v51  ;;  %v3453_v16 = vadd.f32 %v4468_v60, %v4380_v50  ;;  %v3444_v55 = vpop.f32.mrb[155].mxu1 }
 0x38d   : > { %3545 = vst.msk [vmem:[%s6505_s7 + $0x140] sm:$0xff] %vm3504_vm2, %v3442_v56  ;;  %v3445_v32 = vadd.f32 %v6611_v57, %v3444_v55  ;;  %v3224_v3 = vpop.f32.mrb[100].mxu0 }
 0x38e   : > { %3548 = vst.msk [vmem:[%s6505_s7 + $0x158] sm:$0xff] %vm3504_vm2, %v3453_v16  ;;  %v4475_v20 = vadd.f32 %v3224_v3, %v6472_v11  ;;  %v3226_v22 = vpop.f32.mrb[101].mxu0 }
 0x38f   : > { %3546 = vst.msk [vmem:[%s6505_s7 + $0x148] sm:$0xff] %vm3504_vm2, %v3445_v32  ;;  %v3227_v53 = vpop.f32.mrb[102].mxu0 }
 0x390   : > { %v4476_v52 = vadd.f32 %v3227_v53, %v6918_v12  ;;  %v3229_v23 = vpop.f32.mrb[103].mxu0 }
 0x391   : > { %v4383_v37 = vpop.f32.mrb[156].mxu1 }
 0x392   : > { %v3466_v27 = vadd.f32 %v4471_v46, %v4383_v37  ;;  %v3457_v60 = vpop.f32.mrb[157].mxu1 }
 0x393   : > { %v3458_v57 = vadd.f32 %v6638_v21, %v3457_v60  ;;  %v4384_v24 = vpop.f32.mrb[158].mxu1 }
 0x394   : > { %3551 = vst.msk [vmem:[%s6505_s7 + $0x170] sm:$0xff] %vm3504_vm2, %v3466_v27  ;;  %v3469_v58 = vadd.f32 %v4472_v0, %v4384_v24  ;;  %v3460_v42 = vpop.f32.mrb[159].mxu1 }
 0x395   : > { %3549 = vst.msk [vmem:[%s6505_s7 + $0x160] sm:$0xff] %vm3504_vm2, %v3458_v57  ;;  %v3461_v11 = vadd.f32 %v6643_v43, %v3460_v42  ;;  %v3232_v4 = vpop.f32.mrb[104].mxu0 }
 0x396   : > { %3552 = vst.msk [vmem:[%s6505_s7 + $0x178] sm:$0xff] %vm3504_vm2, %v3469_v58  ;;  %v4477_v41 = vadd.f32 %v3232_v4, %v6919_v5  ;;  %v3234_v13 = vpop.f32.mrb[105].mxu0 }
 0x397   : > { %3550 = vst.msk [vmem:[%s6505_s7 + $0x168] sm:$0xff] %vm3504_vm2, %v3461_v11  ;;  %v3235_v62 = vpop.f32.mrb[106].mxu0 }
 0x398   : > { %v4478_v14 = vadd.f32 %v3235_v62, %v6920_v9  ;;  %v3237_v21 = vpop.f32.mrb[107].mxu0 }
 0x399   : > { %v4387_v34 = vpop.f32.mrb[160].mxu1 }
 0x39a   : > { %v3482_v40 = vadd.f32 %v4475_v20, %v4387_v34  ;;  %v3473_v59 = vpop.f32.mrb[161].mxu1 }
 0x39b   : > { %v3474_v35 = vadd.f32 %v4473_v48, %v3473_v59  ;;  %v4388_v43 = vpop.f32.mrb[162].mxu1 }
 0x39c   : > { %3555 = vst.msk [vmem:[%s6505_s7 + $0x190] sm:$0xff] %vm3504_vm2, %v3482_v40  ;;  %v3485_v1 = vadd.f32 %v4476_v52, %v4388_v43  ;;  %v3476_v54 = vpop.f32.mrb[163].mxu1 }
 0x39d   : > { %3553 = vst.msk [vmem:[%s6505_s7 + $0x180] sm:$0xff] %vm3504_vm2, %v3474_v35  ;;  %v3477_v2 = vadd.f32 %v4474_v17, %v3476_v54  ;;  %v3240_v10 = vpop.f32.mrb[108].mxu0 }
 0x39e   : > { %3556 = vst.msk [vmem:[%s6505_s7 + $0x198] sm:$0xff] %vm3504_vm2, %v3485_v1  ;;  %v4479_v33 = vadd.f32 %v3240_v10, %v6492_v19  ;;  %v3242_v61 = vpop.f32.mrb[109].mxu0 }
 0x39f   : > { %3554 = vst.msk [vmem:[%s6505_s7 + $0x188] sm:$0xff] %vm3504_vm2, %v3477_v2  ;;  %v3243_v38 = vpop.f32.mrb[110].mxu0 }
 0x3a0   : > { %v4480_v46 = vadd.f32 %v3243_v38, %v6921_v6  ;;  %v3245_v30 = vpop.f32.mrb[111].mxu0 }
 0x3a1   : > { %v4391_v39 = vpop.f32.mrb[164].mxu1  ;;  %3567 = sbr.rel (!%p5216_p9) target bundleno = 1016 (0x3f8), region = 40 }
 0x3a2   : > { %v3498_v0 = vadd.f32 %v4479_v33, %v4391_v39  ;;  %v3489_v49 = vpop.f32.mrb[165].mxu1 }
 0x3a3   : > { %v3490_v31 = vadd.f32 %v4477_v41, %v3489_v49  ;;  %v4392_v25 = vpop.f32.mrb[166].mxu1 }
 0x3a4   : > { %3559 = vst.msk [vmem:[%s6505_s7 + $0x1b0] sm:$0xff] %vm3504_vm2, %v3498_v0  ;;  %v3501_v47 = vadd.f32 %v4480_v46, %v4392_v25  ;;  %v3492_v8 = vpop.f32.mrb[167].mxu1 }
 0x3a5   : > { %3557 = vst.msk [vmem:[%s6505_s7 + $0x1a0] sm:$0xff] %vm3504_vm2, %v3490_v31  ;;  %v3493_v19 = vadd.f32 %v4478_v14, %v3492_v8 }
 0x3a6   : > { %3560 = vst.msk [vmem:[%s6505_s7 + $0x1b8] sm:$0xff] %vm3504_vm2, %v3501_v47 }
 0x3a7   : > { %3558 = vst.msk [vmem:[%s6505_s7 + $0x1a8] sm:$0xff] %vm3504_vm2, %v3493_v19 }
 0x3a8   : > { %s6937_s22 = smov (!%p3570_p8, %s3569_s22), 56 }
 0x3a9   : > { %s4272_s25 = sshll.u32 %s6937_s22, 7 }
 0x3aa   : > { %p4275_p12 = scmp.eq.s32.totalorder %s4272_s25, 0 }
 0x3ab   : > { %4998 = sdivrem.u32 (!%p4275_p12), %s6937_s22, 56 }
 0x3ac   : > { %3580 = sbr.rel (%p4275_p12) target bundleno = 1016 (0x3f8), region = 44 }
 0x3b4   : > { %s6728_s24 = spop.drf %4998 }
 0x3b5   : > { %p4276_p9 = scmp.le.s32.totalorder %s6728_s24, 0 }
 0x3b6   : > { %s6922_s15 = smov (!%p4276_p9), %s6722_s21  ;;  %s6923_s26 = smov (!%p4276_p9), %s6505_s7 }
 0x3b7   : > { %3973 = sbr.rel (%p4276_p9) target bundleno = 987 (0x3db), region = 129  ;;  %s6737_s27 = smov (!%p4276_p9), 0  }
 0x3b8   : > { %s6739_s28 = smov (!%p4276_p9), 0  }
 0x3be LB: >> { %v3754_v18 = vld [vmem:[%s5120_s26] sm:$0xff]  ;;  %v3756_v63 = vld [vmem:[%s5120_s26 + $0x8] sm:$0xff]  ;;  %v3758_v7 = vld [vmem:[%s5120_s26 + $0x10] sm:$0xff]  ;;  %s3866_s30 = sadd.s32 1, %s5124_s27  ;;  %s3748_s28 = sadd.s32 1, %s5128_s28   ;;  %s5128_s28 = sphi %s6739_s28, %s3748_s28   ;;  %s5124_s27 = sphi %s6737_s27, %s6926_s27   ;;  %s5120_s26 = sphi %s6923_s26, %s6925_s26   ;;  %s5116_s15 = sphi %s6922_s15, %s6924_s15  }
 0x3bf   : >> { %3755 = vst [vmem:[%s5116_s15] sm:$0xff] %v3754_v18  ;;  %3757 = vst [vmem:[%s5116_s15 + $0x8] sm:$0xff] %v3756_v63  ;;  %v3760_v28 = vld [vmem:[%s5120_s26 + $0x18] sm:$0xff]  ;;  %v3762_v26 = vld [vmem:[%s5120_s26 + $0x20] sm:$0xff]  ;;  %p3867_p7 = scmp.ge.s32.totalorder %s3866_s30, %s6728_s24  ;;  %p3747_p10 = scmp.ge.s32.totalorder %s3748_s28, %s6728_s24 }
 0x3c0   : >> { %3759 = vst [vmem:[%s5116_s15 + $0x10] sm:$0xff] %v3758_v7  ;;  %v3764_v48 = vld [vmem:[%s5120_s26 + $0x28] sm:$0xff]  ;;  %3761 = vst [vmem:[%s5116_s15 + $0x18] sm:$0xff] %v3760_v28  ;;  %v3766_v29 = vld [vmem:[%s5120_s26 + $0x30] sm:$0xff] }
 0x3c1   : >> { %3763 = vst [vmem:[%s5116_s15 + $0x20] sm:$0xff] %v3762_v26  ;;  %3765 = vst [vmem:[%s5116_s15 + $0x28] sm:$0xff] %v3764_v48  ;;  %v3768_v45 = vld [vmem:[%s5120_s26 + $0x38] sm:$0xff]  ;;  %v3770_v17 = vld [vmem:[%s5120_s26 + $0x40] sm:$0xff]  ;;  %s6939_s30 = smov (%p3867_p7, %s3866_s30), 0 }
 0x3c2   : >> { %3767 = vst [vmem:[%s5116_s15 + $0x30] sm:$0xff] %v3766_v29  ;;  %3769 = vst [vmem:[%s5116_s15 + $0x38] sm:$0xff] %v3768_v45  ;;  %v3772_v36 = vld [vmem:[%s5120_s26 + $0x48] sm:$0xff]  ;;  %v3774_v15 = vld [vmem:[%s5120_s26 + $0x50] sm:$0xff]  ;;  %s3869_s5 = smul.u32 448, %s6939_s30  ;;  %s6926_s27 = smov %s6939_s30 }
 0x3c3   : >> { %3771 = vst [vmem:[%s5116_s15 + $0x40] sm:$0xff] %v3770_v17  ;;  %v3776_v51 = vld [vmem:[%s5120_s26 + $0x58] sm:$0xff]  ;;  %3773 = vst [vmem:[%s5116_s15 + $0x48] sm:$0xff] %v3772_v36  ;;  %v3778_v44 = vld [vmem:[%s5120_s26 + $0x60] sm:$0xff] }
 0x3c4   : >> { %3775 = vst [vmem:[%s5116_s15 + $0x50] sm:$0xff] %v3774_v15  ;;  %3777 = vst [vmem:[%s5116_s15 + $0x58] sm:$0xff] %v3776_v51  ;;  %v3780_v56 = vld [vmem:[%s5120_s26 + $0x68] sm:$0xff]  ;;  %v3782_v50 = vld [vmem:[%s5120_s26 + $0x70] sm:$0xff]  ;;  %s6801_s6 = scalar_lea.vmem %s6505_s7, %s3869_s5 [#allocation4]   ;;  %s6804_s9 = scalar_lea.vmem %s6722_s21, %s3869_s5  }
 0x3c5   : >> { %3779 = vst [vmem:[%s5116_s15 + $0x60] sm:$0xff] %v3778_v44  ;;  %3781 = vst [vmem:[%s5116_s15 + $0x68] sm:$0xff] %v3780_v56  ;;  %v3784_v16 = vld [vmem:[%s5120_s26 + $0x78] sm:$0xff]  ;;  %v3786_v55 = vld [vmem:[%s5120_s26 + $0x80] sm:$0xff] }
 0x3c6   : >> { %3783 = vst [vmem:[%s5116_s15 + $0x70] sm:$0xff] %v3782_v50  ;;  %v3788_v32 = vld [vmem:[%s5120_s26 + $0x88] sm:$0xff]  ;;  %3785 = vst [vmem:[%s5116_s15 + $0x78] sm:$0xff] %v3784_v16  ;;  %v3790_v3 = vld [vmem:[%s5120_s26 + $0x90] sm:$0xff] }
 0x3c7   : >> { %3787 = vst [vmem:[%s5116_s15 + $0x80] sm:$0xff] %v3786_v55  ;;  %3789 = vst [vmem:[%s5116_s15 + $0x88] sm:$0xff] %v3788_v32  ;;  %v3792_v20 = vld [vmem:[%s5120_s26 + $0x98] sm:$0xff]  ;;  %v3794_v22 = vld [vmem:[%s5120_s26 + $0xa0] sm:$0xff] }
 0x3c8   : >> { %3791 = vst [vmem:[%s5116_s15 + $0x90] sm:$0xff] %v3790_v3  ;;  %3793 = vst [vmem:[%s5116_s15 + $0x98] sm:$0xff] %v3792_v20  ;;  %v3796_v53 = vld [vmem:[%s5120_s26 + $0xa8] sm:$0xff]  ;;  %v3798_v12 = vld [vmem:[%s5120_s26 + $0xb0] sm:$0xff] }
 0x3c9   : >> { %3795 = vst [vmem:[%s5116_s15 + $0xa0] sm:$0xff] %v3794_v22  ;;  %v3800_v52 = vld [vmem:[%s5120_s26 + $0xb8] sm:$0xff]  ;;  %3797 = vst [vmem:[%s5116_s15 + $0xa8] sm:$0xff] %v3796_v53  ;;  %v3802_v23 = vld [vmem:[%s5120_s26 + $0xc0] sm:$0xff] }
 0x3ca   : >> { %3799 = vst [vmem:[%s5116_s15 + $0xb0] sm:$0xff] %v3798_v12  ;;  %3801 = vst [vmem:[%s5116_s15 + $0xb8] sm:$0xff] %v3800_v52  ;;  %v3804_v37 = vld [vmem:[%s5120_s26 + $0xc8] sm:$0xff]  ;;  %v3806_v27 = vld [vmem:[%s5120_s26 + $0xd0] sm:$0xff] }
 0x3cb   : >> { %3803 = vst [vmem:[%s5116_s15 + $0xc0] sm:$0xff] %v3802_v23  ;;  %3805 = vst [vmem:[%s5116_s15 + $0xc8] sm:$0xff] %v3804_v37  ;;  %v3808_v60 = vld [vmem:[%s5120_s26 + $0xd8] sm:$0xff]  ;;  %v3810_v57 = vld [vmem:[%s5120_s26 + $0xe0] sm:$0xff] }
 0x3cc   : >> { %3807 = vst [vmem:[%s5116_s15 + $0xd0] sm:$0xff] %v3806_v27  ;;  %v3812_v24 = vld [vmem:[%s5120_s26 + $0xe8] sm:$0xff]  ;;  %3809 = vst [vmem:[%s5116_s15 + $0xd8] sm:$0xff] %v3808_v60  ;;  %v3814_v58 = vld [vmem:[%s5120_s26 + $0xf0] sm:$0xff] }
 0x3cd   : >> { %3811 = vst [vmem:[%s5116_s15 + $0xe0] sm:$0xff] %v3810_v57  ;;  %3813 = vst [vmem:[%s5116_s15 + $0xe8] sm:$0xff] %v3812_v24  ;;  %v3816_v42 = vld [vmem:[%s5120_s26 + $0xf8] sm:$0xff]  ;;  %v3818_v11 = vld [vmem:[%s5120_s26 + $0x100] sm:$0xff] }
 0x3ce   : >> { %3815 = vst [vmem:[%s5116_s15 + $0xf0] sm:$0xff] %v3814_v58  ;;  %3817 = vst [vmem:[%s5116_s15 + $0xf8] sm:$0xff] %v3816_v42  ;;  %v3820_v4 = vld [vmem:[%s5120_s26 + $0x108] sm:$0xff]  ;;  %v3822_v5 = vld [vmem:[%s5120_s26 + $0x110] sm:$0xff] }
 0x3cf   : >> { %3819 = vst [vmem:[%s5116_s15 + $0x100] sm:$0xff] %v3818_v11  ;;  %v3824_v41 = vld [vmem:[%s5120_s26 + $0x118] sm:$0xff]  ;;  %3821 = vst [vmem:[%s5116_s15 + $0x108] sm:$0xff] %v3820_v4  ;;  %v3826_v13 = vld [vmem:[%s5120_s26 + $0x120] sm:$0xff] }
 0x3d0   : >> { %3823 = vst [vmem:[%s5116_s15 + $0x110] sm:$0xff] %v3822_v5  ;;  %3825 = vst [vmem:[%s5116_s15 + $0x118] sm:$0xff] %v3824_v41  ;;  %v3828_v62 = vld [vmem:[%s5120_s26 + $0x128] sm:$0xff]  ;;  %v3830_v9 = vld [vmem:[%s5120_s26 + $0x130] sm:$0xff] }
 0x3d1   : >> { %3827 = vst [vmem:[%s5116_s15 + $0x120] sm:$0xff] %v3826_v13  ;;  %3829 = vst [vmem:[%s5116_s15 + $0x128] sm:$0xff] %v3828_v62  ;;  %v3832_v14 = vld [vmem:[%s5120_s26 + $0x138] sm:$0xff]  ;;  %v3834_v21 = vld [vmem:[%s5120_s26 + $0x140] sm:$0xff] }
 0x3d2   : >> { %3831 = vst [vmem:[%s5116_s15 + $0x130] sm:$0xff] %v3830_v9  ;;  %v3836_v34 = vld [vmem:[%s5120_s26 + $0x148] sm:$0xff]  ;;  %3833 = vst [vmem:[%s5116_s15 + $0x138] sm:$0xff] %v3832_v14  ;;  %v3838_v40 = vld [vmem:[%s5120_s26 + $0x150] sm:$0xff] }
 0x3d3   : >> { %3835 = vst [vmem:[%s5116_s15 + $0x140] sm:$0xff] %v3834_v21  ;;  %3837 = vst [vmem:[%s5116_s15 + $0x148] sm:$0xff] %v3836_v34  ;;  %v3840_v59 = vld [vmem:[%s5120_s26 + $0x158] sm:$0xff]  ;;  %v3842_v35 = vld [vmem:[%s5120_s26 + $0x160] sm:$0xff] }
 0x3d4   : >> { %3839 = vst [vmem:[%s5116_s15 + $0x150] sm:$0xff] %v3838_v40  ;;  %3841 = vst [vmem:[%s5116_s15 + $0x158] sm:$0xff] %v3840_v59  ;;  %v3844_v43 = vld [vmem:[%s5120_s26 + $0x168] sm:$0xff]  ;;  %v3846_v1 = vld [vmem:[%s5120_s26 + $0x170] sm:$0xff]  ;;  %3750 = sbr.rel (!%p3747_p10) target bundleno = 958 (0x3be), region = 135 }
 0x3d5   : >> { %3843 = vst [vmem:[%s5116_s15 + $0x160] sm:$0xff] %v3842_v35  ;;  %v3848_v54 = vld [vmem:[%s5120_s26 + $0x178] sm:$0xff]  ;;  %3845 = vst [vmem:[%s5116_s15 + $0x168] sm:$0xff] %v3844_v43  ;;  %v3850_v2 = vld [vmem:[%s5120_s26 + $0x180] sm:$0xff] }
 0x3d6   : >> { %3847 = vst [vmem:[%s5116_s15 + $0x170] sm:$0xff] %v3846_v1  ;;  %3849 = vst [vmem:[%s5116_s15 + $0x178] sm:$0xff] %v3848_v54  ;;  %v3852_v10 = vld [vmem:[%s5120_s26 + $0x188] sm:$0xff]  ;;  %v3854_v33 = vld [vmem:[%s5120_s26 + $0x190] sm:$0xff] }
 0x3d7   : >> { %3851 = vst [vmem:[%s5116_s15 + $0x180] sm:$0xff] %v3850_v2  ;;  %3853 = vst [vmem:[%s5116_s15 + $0x188] sm:$0xff] %v3852_v10  ;;  %v3856_v61 = vld [vmem:[%s5120_s26 + $0x198] sm:$0xff]  ;;  %v3858_v38 = vld [vmem:[%s5120_s26 + $0x1a0] sm:$0xff] }
 0x3d8   : >> { %3855 = vst [vmem:[%s5116_s15 + $0x190] sm:$0xff] %v3854_v33  ;;  %v3860_v6 = vld [vmem:[%s5120_s26 + $0x1a8] sm:$0xff]  ;;  %3857 = vst [vmem:[%s5116_s15 + $0x198] sm:$0xff] %v3856_v61  ;;  %v3862_v46 = vld [vmem:[%s5120_s26 + $0x1b0] sm:$0xff] }
 0x3d9   : >> { %3859 = vst [vmem:[%s5116_s15 + $0x1a0] sm:$0xff] %v3858_v38  ;;  %3861 = vst [vmem:[%s5116_s15 + $0x1a8] sm:$0xff] %v3860_v6  ;;  %v3864_v30 = vld [vmem:[%s5120_s26 + $0x1b8] sm:$0xff]  ;;  %s6925_s26 = smov %s6801_s6 }
 0x3da   : >> { %3863 = vst [vmem:[%s5116_s15 + $0x1b0] sm:$0xff] %v3862_v46  ;;  %3865 = vst [vmem:[%s5116_s15 + $0x1b8] sm:$0xff] %v3864_v30  ;;  %s6924_s15 = smov %s6804_s9 }
 0x3db PF: > { %5000 = sdivrem.u32 %s6937_s22, 56 }
 0x3dc   : > { %s4277_s11 = smul.u32 448, %s6728_s24 }
 0x3de   : > { %s3877_s29 = scalar_lea.vmem %s6505_s7, %s4277_s11 [#allocation4]   ;;  %s3879_s4 = scalar_lea.vmem %s6722_s21, %s4277_s11  }
 0x3e4   : > { %s5001_s12 = spop.drf %5000 }
 0x3e5   : > { %p4279_p11 = scmp.le.s32.totalorder %s5001_s12, 0 }
 0x3e6   : > { %s5130_s8 = smov (!%p4279_p11), %s3879_s4   ;;  %s5134_s10 = smov (!%p4279_p11), %s3877_s29  }
 0x3e7   : > { %3987 = sbr.rel (%p4279_p11) target bundleno = 1016 (0x3f8), region = 140  ;;  %s5138_s18 = smov (!%p4279_p11), 0  }
 0x3e8   : > { %s5142_s20 = smov (!%p4279_p11), 0  }
 0x3ee LB: >> { %v3889_v39 = vld [vmem:[%s5136_s10] sm:$0xff]  ;;  %s3891_s25 = sadd.s32 1, %s5140_s18  ;;  %s3883_s20 = sadd.s32 1, %s5144_s20   ;;  %s5144_s20 = sphi %s5142_s20, %s3883_s20   ;;  %s5140_s18 = sphi %s5138_s18, %s5139_s18   ;;  %s5136_s10 = sphi %s5134_s10, %s3896_s10   ;;  %s5132_s8 = sphi %s5130_s8, %s3897_s8  }
 0x3ef   : >> { %3890 = vst [vmem:[%s5132_s8] sm:$0xff] %v3889_v39  ;;  %p3892_p13 = scmp.ge.s32.totalorder %s3891_s25, %s5001_s12  ;;  %p3882_p0 = scmp.ge.s32.totalorder %s3883_s20, %s5001_s12 }
 0x3f1   : >> { %s6941_s25 = smov (%p3892_p13, %s3891_s25), 0  ;;  %3885 = sbr.rel (!%p3882_p0) target bundleno = 1006 (0x3ee), region = 146 }
 0x3f2   : >> { %s4280_s7 = sshll.u32 %s6941_s25, 3  ;;  %s5139_s18 = smov %s6941_s25  }
 0x3f3   : >> { %s3896_s10 = scalar_lea.vmem %s3877_s29, %s4280_s7 [#allocation4]   ;;  %s3897_s8 = scalar_lea.vmem %s3879_s4, %s4280_s7  }
 0x3f8 PF: > { %s16_s17 = sadd.s32 1, %s5112_s17   ;;  %s6927_s12 = smov %s5096_s13 }
 0x3f9   : > { %p13_p2 = scmp.ge.s32.totalorder %s16_s17, 4   ;;  %s6928_s13 = smov %s5100_s14 }
 0x3fa   : > { %s6929_s14 = smov %s5214_s23  ;;  %s6930_s15 = smov %s5108_s16 }
 0x3fb   : > { %s6931_s16 = smov %s6933_s19  ;;  %15 = sbr.rel (!%p13_p2) target bundleno = 4 (0x4), region = 157 }
 0x402   :  { %3913 = vsyncpa [#allocation3], 1 }
 0x403   :  { %3915 = vsyncpa [#allocation3 + $0x1], 1 }

</bundles_post_ra>
